<compile_context>
chip_gen: v7x
topology: tpu7x:2x2x1
jax: 0.10.0
libtpu: 0.0.40
codegen_flags: <defaults>
</compile_context>

<pallas_src>
import functools

import numpy as np

import jax
import jax.numpy as jnp
from jax.experimental import pallas as pl
from jax.experimental.pallas import tpu as pltpu


_LANE = 128  # TPU lane width; time lives on the lane axis everywhere.


@functools.lru_cache(maxsize=1)
def _vmem_limit_bytes():
    """Generation-aware scoped-VMEM limit: ~3/4 of physical (96 MiB v5e/v6e, 48 MiB v7x)."""
    try:
        cap = int(pltpu.get_tpu_info().vmem_capacity_bytes)
        return (cap * 3) // 4
    except Exception:
        return None  # fall back to the compiler default


def _stage(k, d=1, p=None, leaky=None, residual=False, add_acc=False,
           scale=1.0, tanh=False):
    """Static per-conv config of a fused chain."""
    if p is None:
        p = (k - 1) * d // 2
    return dict(k=k, d=d, p=p, leaky=leaky, residual=residual,
                add_acc=add_acc, scale=scale, tanh=tanh)


def _shift_cols(a, off):
    """a_shift[:, c] = a[:, (c + off) mod W]; wrapped columns are don't-care (XLU roll)."""
    W = a.shape[-1]
    s = off % W
    if s == 0:
        return a
    return pltpu.roll(a, shift=(W - s) % W, axis=1)


# ------------------------------ fused chain-conv kernel ------------------------------

def _chain_kernel(*refs, stages, has_acc, t_tile):
    """One time tile of a chain of fused Conv1d stages on a fixed halo frame.

    refs = (t_valid, x, x_lhalo, x_rhalo, [acc, acc_lhalo, acc_rhalo],
            (w_s, b_s) per stage, out)
      x:      (C_in, t_tile)           halos: (C_in, 128)
      w_s:    (K_s, R_s, C_s)          b_s: (R_s, 1)
      out:    (R_last, t_tile)
    Frame = [left halo | tile | right halo] of width W = t_tile + 256; all intermediates
    live on the frame, out-of-receptive-field frame columns never reach the stored tile.
    """
    tv_ref = refs[0]
    x_ref, xl_ref, xr_ref = refs[1:4]
    idx = 4
    if has_acc:
        a_ref, al_ref, ar_ref = refs[idx:idx + 3]
        idx += 3
    wb_refs = refs[idx:-1]
    o_ref = refs[-1]

    W = t_tile + 2 * _LANE
    t = pl.program_id(1)

    # Global column index of every frame position; the validity mask implements both the
    # conv zero padding (left of 0 / right of t_valid) and the sequence-edge halo masking.
    gcol = jax.lax.broadcasted_iota(jnp.int32, (1, W), 1) + (t * t_tile - _LANE)
    valid = (gcol >= 0) & (gcol < tv_ref[0])

    ext = jnp.concatenate([xl_ref[...], x_ref[...], xr_ref[...]], axis=1)
    cur = jnp.where(valid, ext.astype(jnp.float32), 0.0)

    if has_acc:
        acc_ext = jnp.concatenate([al_ref[...], a_ref[...], ar_ref[...]], axis=1)
        acc_ext = jnp.where(valid, acc_ext.astype(jnp.float32), 0.0)

    for s, st in enumerate(stages):
        w_ref = wb_refs[2 * s]
        b_ref = wb_refs[2 * s + 1]

        a = cur
        if st["leaky"] is not None:
            # leaky(0) == 0, so applying it after the zero-padding mask is identical to
            # applying it before the conv as in the PyTorch forward.
            a = jnp.where(a >= 0, a, jnp.float32(st["leaky"]) * a)

        # K accumulating MXU dots over roll-shifted views (no im2col materialization).
        y = None
        for kk in range(st["k"]):
            off = kk * st["d"] - st["p"]
            contrib = jnp.dot(w_ref[kk], _shift_cols(a, off),
                              preferred_element_type=jnp.float32)
            y = contrib if y is None else y + contrib
        y = y + b_ref[...]                       # bias: VPU broadcast add

        if st["residual"]:
            y = y + cur                          # x + conv(leaky(x))
        if st["add_acc"]:
            y = y + acc_ext                      # MRF running sum
        if st["scale"] != 1.0:
            y = y * jnp.float32(st["scale"])     # 1 / num_kernels
        y = jnp.where(valid, y, 0.0)             # keep the zeroed-padding invariant
        if st["tanh"]:
            y = jnp.tanh(y)
        cur = y

    o_ref[...] = cur[:, _LANE:_LANE + t_tile].astype(o_ref.dtype)


# --------------------------------- wrapper / tiling ----------------------------------

def _pick_time_tile(t_store, c_in, c_acc, stage_dims, weight_bytes):
    """Largest time tile (multiple of 128 dividing t_store) fitting the VMEM budget."""
    limit = _vmem_limit_bytes() or (32 * 1024 * 1024)
    fixed = 2 * weight_bytes + 4 * 2 * 2 * _LANE * (c_in + c_acc)  # weights + halo bufs
    budget = max(2 * 1024 * 1024, limit // 2 - fixed)
    r_out = stage_dims[-1][0]
    widest = max(r + c for (r, c) in stage_dims)
    # rough f32 bytes per time column live in the kernel (double-buffered I/O tiles,
    # the frame, and a few intermediates of the widest stage).
    per_col = 4 * (3 * c_in + 3 * r_out + 3 * c_acc + 3 * widest)
    max_cols = max(_LANE, budget // max(per_col, 1))
    max_cols = min(max_cols, 16384)
    nblk = t_store // _LANE
    best = _LANE
    for dblk in range(1, nblk + 1):
        if nblk % dblk == 0 and dblk * _LANE <= max_cols:
            best = dblk * _LANE
    return best


def fused_chain_conv1d(x, stages, weights, *, t_valid, acc=None):
    """Time-tiled fused chain of Conv1d stages (residuals / MRF sum / post / tanh fused).

    x:       (B, C_in, T_store), T_store % 128 == 0, columns >= t_valid are zero.
    stages:  list of _stage dicts.
    weights: list of ((K_s, R_s, C_s) weight, (R_s, 1) bias), one per stage.
    acc:     optional (B, C_acc, T_store) added at the stage with add_acc=True.
    Returns  (B, R_last, T_store) f32; columns >= t_valid are zero.
    """
    B, C_in, T_store = x.shape
    assert T_store % _LANE == 0
    assert len(weights) == len(stages)
    has_acc = acc is not None
    assert has_acc == any(st["add_acc"] for st in stages)

    # The chain's cumulative receptive-field extension must fit one 128-lane halo.
    lm = sum(st["p"] for st in stages)
    rm = sum((st["k"] - 1) * st["d"] - st["p"] for st in stages)
    assert 0 <= lm <= _LANE and 0 <= rm <= _LANE, (lm, rm)

    stage_dims = []
    c_prev = C_in
    for st, (w, b) in zip(stages, weights):
        K, R, C = w.shape
        assert K == st["k"] and C == c_prev and b.shape == (R, 1)
        if st["residual"]:
            assert R == C
        stage_dims.append((R, C))
        c_prev = R
    R_out = c_prev
    C_acc = acc.shape[1] if has_acc else 0
    if has_acc:
        assert acc.shape == (B, C_acc, T_store)

    weight_bytes = 4 * int(sum(w.size + b.size for (w, b) in weights))
    t_tile = _pick_time_tile(T_store, C_in, C_acc, stage_dims, weight_bytes)
    nt = T_store // t_tile
    c128 = t_tile // _LANE
    n128 = T_store // _LANE

    kernel = functools.partial(_chain_kernel, stages=tuple(stages),
                               has_acc=has_acc, t_tile=t_tile)

    # index_maps receive the scalar-prefetch ref (t_valid) as a trailing positional arg.
    def tile_map(b, t, tv):
        return (b, 0, t)

    def lhalo_map(b, t, tv):
        return (b, 0, jnp.maximum(t * c128 - 1, 0))

    def rhalo_map(b, t, tv):
        return (b, 0, jnp.minimum((t + 1) * c128, n128 - 1))

    in_specs = [pl.BlockSpec((None, C_in, t_tile), tile_map),
                pl.BlockSpec((None, C_in, _LANE), lhalo_map),
                pl.BlockSpec((None, C_in, _LANE), rhalo_map)]
    args = [x, x, x]
    if has_acc:
        in_specs += [pl.BlockSpec((None, C_acc, t_tile), tile_map),
                     pl.BlockSpec((None, C_acc, _LANE), lhalo_map),
                     pl.BlockSpec((None, C_acc, _LANE), rhalo_map)]
        args += [acc, acc, acc]
    for (w, b) in weights:
        # Full-array weight / bias blocks with a constant index map (VMEM-resident).
        # TODO(synk): pipeline_mode=pl.Buffered(1) would single-buffer these on v7x.
        in_specs += [pl.BlockSpec(w.shape, lambda bb, tt, tv: (0, 0, 0)),
                     pl.BlockSpec(b.shape, lambda bb, tt, tv: (0, 0))]
        args += [w, b]

    flops = 2 * B * T_store * sum(st["k"] * r * c
                                  for (r, c), st in zip(stage_dims, stages))
    transc = B * T_store * sum(r for (r, _), st in zip(stage_dims, stages) if st["tanh"])
    bytes_accessed = 4 * B * T_store * (C_in + R_out + C_acc) + weight_bytes

    return pl.pallas_call(
        kernel,
        out_shape=jax.ShapeDtypeStruct((B, R_out, T_store), jnp.float32),
        grid_spec=pltpu.PrefetchScalarGridSpec(
            num_scalar_prefetch=1,
            grid=(B, nt),
            in_specs=in_specs,
            out_specs=pl.BlockSpec((None, R_out, t_tile), tile_map)),
        compiler_params=pltpu.CompilerParams(
            dimension_semantics=("parallel", "parallel"),
            vmem_limit_bytes=_vmem_limit_bytes()),
        cost_estimate=pl.CostEstimate(flops=int(flops), transcendentals=int(transc),
                                      bytes_accessed=int(bytes_accessed)),
    )(jnp.asarray([t_valid], jnp.int32), *args)


# ----------------------------- fused weight construction -----------------------------

def make_conv_wb(w, b):
    """(C_out, C_in, K) PyTorch Conv1d weight + (C_out,) bias -> ((K, C_out, C_in), (C_out, 1))."""
    w = jnp.asarray(w, jnp.float32)
    return (jnp.transpose(w, (2, 0, 1)), jnp.asarray(b, jnp.float32).reshape(-1, 1))


def make_convT_wb(w_t, b, up):
    """Polyphase rewrite of ConvTranspose1d(stride=up, padding=(K-up)//2).

    Returns (w3, b2, k_taps, p_left): a fused conv whose R = C_out*up output rows
    (row o*up + r) are output phase r of channel o computed from the un-stuffed input;
    interleaving the phases along time reproduces the transposed convolution.
    """
    C_in, C_out, K = w_t.shape
    assert (K - up) % 2 == 0, "padding=(K-up)//2 assumes K-up even"
    p = (K - up) // 2
    q_lo = min(-((K - 1 - (r + p)) // up) for r in range(up))   # ceil((r+p-K+1)/up)
    q_hi = max((r + p) // up for r in range(up))
    k_taps = q_hi - q_lo + 1
    p_left = -q_lo

    w_np = np.asarray(w_t, np.float32)
    W3 = np.zeros((k_taps, C_out * up, C_in), np.float32)
    for r in range(up):
        for kk in range(k_taps):
            k = r + p - (q_lo + kk) * up
            if 0 <= k < K:
                W3[kk, r::up, :] = w_np[:, :, k].T
    b2 = np.repeat(np.asarray(b, np.float32), up).reshape(-1, 1)
    return jnp.asarray(W3), jnp.asarray(b2), k_taps, p_left


def build_fused_params(raw, cfg):
    fused = {"pre": make_conv_wb(raw["pre_w"], raw["pre_b"]),
             "post": make_conv_wb(raw["post_w"], raw["post_b"]),
             "convT": [], "mrf": []}
    for i, up in enumerate(cfg["upsample_rates"]):
        w_t, b_t = raw["convT"][i]
        fused["convT"].append(make_convT_wb(w_t, b_t, up))
        fused["mrf"].append([[make_conv_wb(w, b) for (w, b) in chain]
                             for chain in raw["mrf"][i]])
    return fused


# ------------------------------- Generator forward (Pallas) --------------------------

def generator_forward_pallas(fused, x, cfg):
    leaky = cfg["leaky"]
    ks = cfg["resblock_kernel_sizes"]
    dss = cfg["resblock_dilation_sizes"]
    ups = cfg["upsample_rates"]
    n_res = len(ks)
    B, _, T = x.shape

    # Activations are stored zero-padded to a multiple of 128 lanes; every kernel keeps
    # columns >= t_valid zeroed, which provides the next layer's implicit right padding.
    t_store = -(-T // _LANE) * _LANE
    h = jnp.pad(x, ((0, 0), (0, 0), (0, t_store - T))).astype(jnp.float32)
    tv = T

    # pre_conv: Conv1d(80, C0, 7, padding=3)
    h = fused_chain_conv1d(h, [_stage(k=7)], [fused["pre"]], t_valid=tv)

    for i, up in enumerate(ups):
        last_stage = i == len(ups) - 1

        # ConvTranspose1d(F.leaky_relu(h)) as a polyphase conv (no zero stuffing).
        # F.leaky_relu default slope 0.01 here (the PyTorch forward does not pass self.leaky).
        w3, b2, kT, pT = fused["convT"][i]
        y = fused_chain_conv1d(h, [_stage(k=kT, d=1, p=pT, leaky=0.01)], [(w3, b2)],
                               t_valid=tv)
        Bc, R, Ts = y.shape
        c_out = R // up
        # TODO(synk): fuse this phase interleave into the kernel epilogue; the required
        # minor-dim lane interleave does not lower robustly in Mosaic today.
        h = jnp.transpose(y.reshape(Bc, c_out, up, Ts),
                          (0, 1, 3, 2)).reshape(Bc, c_out, Ts * up)
        tv = tv * up

        # MRF block: mean over resblocks; each resblock chains x = x + conv_d(leaky(x)).
        # One pallas_call per resblock chain; residual adds, the MRF running sum, the
        # 1/num_kernels mean and (last stage only) the post_conv+tanh are fused.
        acc = None
        for j, (k, ds) in enumerate(zip(ks, dss)):
            last_block = j == n_res - 1
            stages, wbs = [], []
            for di, d in enumerate(ds):
                last_conv = di == len(ds) - 1
                stages.append(_stage(
                    k=k, d=d, leaky=leaky, residual=True,
                    add_acc=last_conv and acc is not None,
                    scale=(1.0 / n_res) if (last_conv and last_block) else 1.0))
                wbs.append(fused["mrf"][i][j][di])
            if last_block and last_stage:
                # post_conv(F.leaky_relu(h, leaky)) -> tanh, fused into the final chain.
                stages.append(_stage(k=7, leaky=leaky, tanh=True))
                wbs.append(fused["post"])
            out = fused_chain_conv1d(h, stages, wbs, t_valid=tv, acc=acc)
            if last_block:
                h = out
            else:
                acc = out

    return h[:, :, :tv]


# ------------------------------- pure-JAX reference ---------------------------------

def _ref_conv(x, w, b, *, dilation=1, padding=0, leaky_pre=False, leaky_coef=0.1,
              tanh_post=False):
    if leaky_pre:
        x = jnp.where(x >= 0, x, leaky_coef * x)
    y = jax.lax.conv_general_dilated(
        x, w, window_strides=(1,), padding=[(padding, padding)],
        rhs_dilation=(dilation,), dimension_numbers=("NCH", "OIH", "NCH"),
        precision=jax.lax.Precision.HIGHEST)
    y = y + b[None, :, None]
    return jnp.tanh(y) if tanh_post else y


def _ref_convT(x, w_t, b, *, stride, padding):
    # ConvTranspose1d == zero-stuff + conv with the flipped / transposed kernel.
    B, C, T = x.shape
    up = stride
    K = w_t.shape[2]
    z = jnp.zeros((B, C, T, up), x.dtype).at[:, :, :, 0].set(x)
    z = z.reshape(B, C, T * up)[:, :, : (T - 1) * up + 1]
    w_conv = jnp.flip(jnp.transpose(w_t, (1, 0, 2)), axis=2)   # (C_out, C_in, K)
    return _ref_conv(z, w_conv, b, padding=K - 1 - padding)


def generator_forward_ref(raw, x, cfg):
    leaky = cfg["leaky"]
    h = _ref_conv(x, raw["pre_w"], raw["pre_b"], padding=3)
    for i, (k_up, up) in enumerate(zip(cfg["upsample_kernel_sizes"],
                                       cfg["upsample_rates"])):
        w_t, b_t = raw["convT"][i]
        h = jnp.where(h >= 0, h, 0.01 * h)                      # F.leaky_relu default
        h = _ref_convT(h, w_t, b_t, stride=up, padding=(k_up - up) // 2)
        acc = jnp.zeros_like(h)
        for (k, ds), chain in zip(zip(cfg["resblock_kernel_sizes"],
                                      cfg["resblock_dilation_sizes"]), raw["mrf"][i]):
            xres = h
            for d, (w, b) in zip(ds, chain):
                xres = xres + _ref_conv(xres, w, b, dilation=d, padding=(k - 1) * d // 2,
                                        leaky_pre=True, leaky_coef=leaky)
            acc = acc + xres
        h = acc / len(cfg["resblock_kernel_sizes"])
    return _ref_conv(h, raw["post_w"], raw["post_b"], padding=3,
                     leaky_pre=True, leaky_coef=leaky, tanh_post=True)


# ------------------------------- parameter init --------------------------------------

def init_params(key, cfg):
    # weight_norm at fresh init is the identity reparameterization, so effective
    # weights are just the randomly initialized tensors (PyTorch layouts kept here).
    C0 = cfg["upsample_init_channel"]
    keys = iter(jax.random.split(key, 64))

    def nrm(shape, scale):
        return jax.random.normal(next(keys), shape, jnp.float32) * scale

    raw = {"pre_w": nrm((C0, 80, 7), 0.1), "pre_b": nrm((C0,), 0.01),
           "convT": [], "mrf": []}
    cin = C0
    for i, (k_up, up) in enumerate(zip(cfg["upsample_kernel_sizes"],
                                       cfg["upsample_rates"])):
        cout = C0 // 2 ** (i + 1)
        raw["convT"].append((nrm((cin, cout, k_up), 0.1), nrm((cout,), 0.01)))
        blocks = []
        for k, ds in zip(cfg["resblock_kernel_sizes"], cfg["resblock_dilation_sizes"]):
            blocks.append([(nrm((cout, cout, k), 0.1), nrm((cout,), 0.01)) for _ in ds])
        raw["mrf"].append(blocks)
        cin = cout
    raw["post_w"] = nrm((1, cin, 7), 0.1)
    raw["post_b"] = nrm((1,), 0.01)
    return raw


# ------------------------------------ main --------------------------------------------

if __name__ == "__main__":
    cfg = dict(
        upsample_rates=(2, 2),
        upsample_kernel_sizes=(4, 4),
        upsample_init_channel=32,
        resblock_kernel_sizes=(3, 5),
        resblock_dilation_sizes=((1, 3), (1, 3)),
        leaky=0.1,
    )
    key = jax.random.PRNGKey(0)
    pkey, xkey = jax.random.split(key)
    raw = init_params(pkey, cfg)
    fused = build_fused_params(raw, cfg)

    B, n_mels, T = 2, 80, 8
    x = jax.random.normal(xkey, (B, n_mels, T), jnp.float32)

    out = jax.block_until_ready(generator_forward_pallas(fused, x, cfg))
    T_out = T * int(np.prod(cfg["upsample_rates"]))
    assert out.shape == (B, 1, T_out), out.shape

    ref = jax.block_until_ready(generator_forward_ref(raw, x, cfg))
    np.testing.assert_allclose(np.asarray(out), np.asarray(ref), rtol=5e-4, atol=5e-4)
    print("KERNEL_OK")
</pallas_src>

<mosaic_0001>
module attributes {stable_mosaic.version = 11 : i64} {
  func.func @_chain_kernel(%arg0: i32, %arg1: i32, %arg2: memref<1xi32, #tpu.memory_space<smem>>, %arg3: memref<1x80x128xf32, #tpu.memory_space<vmem>>, %arg4: memref<1x80x128xf32, #tpu.memory_space<vmem>>, %arg5: memref<1x80x128xf32, #tpu.memory_space<vmem>>, %arg6: memref<7x32x80xf32, #tpu.memory_space<vmem>>, %arg7: memref<32x1xf32, #tpu.memory_space<vmem>>, %arg8: memref<1x32x128xf32, #tpu.memory_space<vmem>>) attributes {dimension_semantics = [#tpu.dimension_semantics<parallel>, #tpu.dimension_semantics<parallel>], iteration_bounds = array<i64: 2, 1>, scalar_prefetch = 1 : i64, scratch_operands = 0 : i64, tpu.core_type = #tpu.core_type<tc>, window_params = [{transform_indices = @transform_0, window_bounds = array<i64: 1, 80, 128>}, {transform_indices = @transform_1, window_bounds = array<i64: 1, 80, 128>}, {transform_indices = @transform_2, window_bounds = array<i64: 1, 80, 128>}, {pipeline_mode = #tpu.pipeline_mode<synchronous>, transform_indices = @transform_3, window_bounds = array<i64: 7, 32, 80>}, {pipeline_mode = #tpu.pipeline_mode<synchronous>, transform_indices = @transform_4, window_bounds = array<i64: 32, 1>}, {transform_indices = @transform_5, window_bounds = array<i64: 1, 32, 128>}]} {
    %0 = tpu.iota {dimensions = array<i32: 1>} : vector<1x384xi32>
    %c128_i32 = arith.constant 128 : i32
    %1 = arith.muli %arg1, %c128_i32 : i32
    %c128_i32_0 = arith.constant 128 : i32
    %2 = arith.subi %1, %c128_i32_0 : i32
    %3 = vector.broadcast %2 : i32 to vector<1x384xi32>
    %4 = arith.addi %0, %3 : vector<1x384xi32>
    %c0_i32 = arith.constant 0 : i32
    %5 = vector.broadcast %c0_i32 : i32 to vector<1x384xi32>
    %6 = arith.cmpi sge, %4, %5 : vector<1x384xi32>
    %c0 = arith.constant 0 : index
    %7 = memref.load %arg2[%c0] : memref<1xi32, #tpu.memory_space<smem>>
    %8 = vector.broadcast %7 : i32 to vector<1x384xi32>
    %9 = arith.cmpi slt, %4, %8 : vector<1x384xi32>
    %10 = arith.andi %6, %9 : vector<1x384xi1>
    %c0_1 = arith.constant 0 : index
    %c0_2 = arith.constant 0 : index
    %c0_3 = arith.constant 0 : index
    %11 = vector.load %arg4[%c0_1, %c0_2, %c0_3] : memref<1x80x128xf32, #tpu.memory_space<vmem>>, vector<1x80x128xf32>
    %12 = vector.shape_cast %11 : vector<1x80x128xf32> to vector<80x128xf32>
    %c0_4 = arith.constant 0 : index
    %c0_5 = arith.constant 0 : index
    %c0_6 = arith.constant 0 : index
    %13 = vector.load %arg3[%c0_4, %c0_5, %c0_6] : memref<1x80x128xf32, #tpu.memory_space<vmem>>, vector<1x80x128xf32>
    %14 = vector.shape_cast %13 : vector<1x80x128xf32> to vector<80x128xf32>
    %c0_7 = arith.constant 0 : index
    %c0_8 = arith.constant 0 : index
    %c0_9 = arith.constant 0 : index
    %15 = vector.load %arg5[%c0_7, %c0_8, %c0_9] : memref<1x80x128xf32, #tpu.memory_space<vmem>>, vector<1x80x128xf32>
    %16 = vector.shape_cast %15 : vector<1x80x128xf32> to vector<80x128xf32>
    %17 = tpu.concatenate %12, %14, %16 in 1 : vector<80x128xf32>, vector<80x128xf32>, vector<80x128xf32> -> vector<80x384xf32>
    %cst = arith.constant 0.000000e+00 : f32
    %18 = vector.shape_cast %10 : vector<1x384xi1> to vector<1x384xi1>
    %19 = vector.broadcast %18 : vector<1x384xi1> to vector<80x384xi1>
    %20 = vector.broadcast %cst : f32 to vector<80x384xf32>
    %21 = arith.select %19, %17, %20 : vector<80x384xi1>, vector<80x384xf32>
    %c0_10 = arith.constant 0 : index
    %c0_11 = arith.constant 0 : index
    %c0_12 = arith.constant 0 : index
    %22 = vector.load %arg6[%c0_10, %c0_11, %c0_12] : memref<7x32x80xf32, #tpu.memory_space<vmem>>, vector<1x32x80xf32>
    %23 = vector.shape_cast %22 : vector<1x32x80xf32> to vector<32x80xf32>
    %c3_i32 = arith.constant 3 : i32
    %24 = tpu.dynamic_rotate %21 by %c3_i32 dim 1 : vector<80x384xf32>, i32 -> vector<80x384xf32>
    %cst_13 = arith.constant dense<0.000000e+00> : vector<32x384xf32>
    %25 = tpu.matmul %23, %24, %cst_13 {dimension_numbers = #tpu.dot_dimension_numbers<[1], [0], [0], [1], [0, 0, 1, 1], [], []>} : vector<32x80xf32>, vector<80x384xf32>, vector<32x384xf32> -> vector<32x384xf32>
    %c1 = arith.constant 1 : index
    %c0_14 = arith.constant 0 : index
    %c0_15 = arith.constant 0 : index
    %26 = vector.load %arg6[%c1, %c0_14, %c0_15] : memref<7x32x80xf32, #tpu.memory_space<vmem>>, vector<1x32x80xf32>
    %27 = vector.shape_cast %26 : vector<1x32x80xf32> to vector<32x80xf32>
    %c2_i32 = arith.constant 2 : i32
    %28 = tpu.dynamic_rotate %21 by %c2_i32 dim 1 : vector<80x384xf32>, i32 -> vector<80x384xf32>
    %cst_16 = arith.constant dense<0.000000e+00> : vector<32x384xf32>
    %29 = tpu.matmul %27, %28, %cst_16 {dimension_numbers = #tpu.dot_dimension_numbers<[1], [0], [0], [1], [0, 0, 1, 1], [], []>} : vector<32x80xf32>, vector<80x384xf32>, vector<32x384xf32> -> vector<32x384xf32>
    %30 = arith.addf %25, %29 : vector<32x384xf32>
    %c2 = arith.constant 2 : index
    %c0_17 = arith.constant 0 : index
    %c0_18 = arith.constant 0 : index
    %31 = vector.load %arg6[%c2, %c0_17, %c0_18] : memref<7x32x80xf32, #tpu.memory_space<vmem>>, vector<1x32x80xf32>
    %32 = vector.shape_cast %31 : vector<1x32x80xf32> to vector<32x80xf32>
    %c1_i32 = arith.constant 1 : i32
    %33 = tpu.dynamic_rotate %21 by %c1_i32 dim 1 : vector<80x384xf32>, i32 -> vector<80x384xf32>
    %cst_19 = arith.constant dense<0.000000e+00> : vector<32x384xf32>
    %34 = tpu.matmul %32, %33, %cst_19 {dimension_numbers = #tpu.dot_dimension_numbers<[1], [0], [0], [1], [0, 0, 1, 1], [], []>} : vector<32x80xf32>, vector<80x384xf32>, vector<32x384xf32> -> vector<32x384xf32>
    %35 = arith.addf %30, %34 : vector<32x384xf32>
    %c3 = arith.constant 3 : index
    %c0_20 = arith.constant 0 : index
    %c0_21 = arith.constant 0 : index
    %36 = vector.load %arg6[%c3, %c0_20, %c0_21] : memref<7x32x80xf32, #tpu.memory_space<vmem>>, vector<1x32x80xf32>
    %37 = vector.shape_cast %36 : vector<1x32x80xf32> to vector<32x80xf32>
    %cst_22 = arith.constant dense<0.000000e+00> : vector<32x384xf32>
    %38 = tpu.matmul %37, %21, %cst_22 {dimension_numbers = #tpu.dot_dimension_numbers<[1], [0], [0], [1], [0, 0, 1, 1], [], []>} : vector<32x80xf32>, vector<80x384xf32>, vector<32x384xf32> -> vector<32x384xf32>
    %39 = arith.addf %35, %38 : vector<32x384xf32>
    %c4 = arith.constant 4 : index
    %c0_23 = arith.constant 0 : index
    %c0_24 = arith.constant 0 : index
    %40 = vector.load %arg6[%c4, %c0_23, %c0_24] : memref<7x32x80xf32, #tpu.memory_space<vmem>>, vector<1x32x80xf32>
    %41 = vector.shape_cast %40 : vector<1x32x80xf32> to vector<32x80xf32>
    %c383_i32 = arith.constant 383 : i32
    %42 = tpu.dynamic_rotate %21 by %c383_i32 dim 1 : vector<80x384xf32>, i32 -> vector<80x384xf32>
    %cst_25 = arith.constant dense<0.000000e+00> : vector<32x384xf32>
    %43 = tpu.matmul %41, %42, %cst_25 {dimension_numbers = #tpu.dot_dimension_numbers<[1], [0], [0], [1], [0, 0, 1, 1], [], []>} : vector<32x80xf32>, vector<80x384xf32>, vector<32x384xf32> -> vector<32x384xf32>
    %44 = arith.addf %39, %43 : vector<32x384xf32>
    %c5 = arith.constant 5 : index
    %c0_26 = arith.constant 0 : index
    %c0_27 = arith.constant 0 : index
    %45 = vector.load %arg6[%c5, %c0_26, %c0_27] : memref<7x32x80xf32, #tpu.memory_space<vmem>>, vector<1x32x80xf32>
    %46 = vector.shape_cast %45 : vector<1x32x80xf32> to vector<32x80xf32>
    %c382_i32 = arith.constant 382 : i32
    %47 = tpu.dynamic_rotate %21 by %c382_i32 dim 1 : vector<80x384xf32>, i32 -> vector<80x384xf32>
    %cst_28 = arith.constant dense<0.000000e+00> : vector<32x384xf32>
    %48 = tpu.matmul %46, %47, %cst_28 {dimension_numbers = #tpu.dot_dimension_numbers<[1], [0], [0], [1], [0, 0, 1, 1], [], []>} : vector<32x80xf32>, vector<80x384xf32>, vector<32x384xf32> -> vector<32x384xf32>
    %49 = arith.addf %44, %48 : vector<32x384xf32>
    %c6 = arith.constant 6 : index
    %c0_29 = arith.constant 0 : index
    %c0_30 = arith.constant 0 : index
    %50 = vector.load %arg6[%c6, %c0_29, %c0_30] : memref<7x32x80xf32, #tpu.memory_space<vmem>>, vector<1x32x80xf32>
    %51 = vector.shape_cast %50 : vector<1x32x80xf32> to vector<32x80xf32>
    %c381_i32 = arith.constant 381 : i32
    %52 = tpu.dynamic_rotate %21 by %c381_i32 dim 1 : vector<80x384xf32>, i32 -> vector<80x384xf32>
    %cst_31 = arith.constant dense<0.000000e+00> : vector<32x384xf32>
    %53 = tpu.matmul %51, %52, %cst_31 {dimension_numbers = #tpu.dot_dimension_numbers<[1], [0], [0], [1], [0, 0, 1, 1], [], []>} : vector<32x80xf32>, vector<80x384xf32>, vector<32x384xf32> -> vector<32x384xf32>
    %54 = arith.addf %49, %53 : vector<32x384xf32>
    %c0_32 = arith.constant 0 : index
    %c0_33 = arith.constant 0 : index
    %55 = vector.load %arg7[%c0_32, %c0_33] : memref<32x1xf32, #tpu.memory_space<vmem>>, vector<32x1xf32>
    %56 = vector.broadcast %55 : vector<32x1xf32> to vector<32x384xf32>
    %57 = arith.addf %54, %56 : vector<32x384xf32>
    %cst_34 = arith.constant 0.000000e+00 : f32
    %58 = vector.shape_cast %10 : vector<1x384xi1> to vector<1x384xi1>
    %59 = vector.broadcast %58 : vector<1x384xi1> to vector<32x384xi1>
    %60 = vector.broadcast %cst_34 : f32 to vector<32x384xf32>
    %61 = arith.select %59, %57, %60 : vector<32x384xi1>, vector<32x384xf32>
    %62 = vector.extract_strided_slice %61 {offsets = [0, 128], sizes = [32, 128], strides = [1, 1]} : vector<32x384xf32> to vector<32x128xf32>
    %c0_35 = arith.constant 0 : index
    %c0_36 = arith.constant 0 : index
    %c0_37 = arith.constant 0 : index
    %63 = vector.load %arg8[%c0_35, %c0_36, %c0_37] : memref<1x32x128xf32, #tpu.memory_space<vmem>>, vector<1x32x128xf32>
    %64 = vector.shape_cast %63 : vector<1x32x128xf32> to vector<32x128xf32>
    %65 = vector.shape_cast %62 : vector<32x128xf32> to vector<1x32x128xf32>
    tpu.vector_store %arg8[%c0_35, %c0_36, %c0_37], %65 {strides = array<i32>} : memref<1x32x128xf32, #tpu.memory_space<vmem>>, vector<1x32x128xf32>,
    return
  }
  func.func @transform_0(%arg0: i32, %arg1: i32, %arg2: memref<1xi32, #tpu.memory_space<smem>>) -> (i32, i32, i32) {
    %c0_i32 = arith.constant 0 : i32
    %c0_i32_0 = arith.constant 0 : i32
    return %arg0, %c0_i32, %arg1 : i32, i32, i32
  }
  func.func @transform_1(%arg0: i32, %arg1: i32, %arg2: memref<1xi32, #tpu.memory_space<smem>>) -> (i32, i32, i32) {
    %c1_i32 = arith.constant 1 : i32
    %0 = arith.muli %arg1, %c1_i32 : i32
    %c1_i32_0 = arith.constant 1 : i32
    %1 = arith.subi %0, %c1_i32_0 : i32
    %c0_i32 = arith.constant 0 : i32
    %2 = arith.maxsi %1, %c0_i32 : i32
    %c0_i32_1 = arith.constant 0 : i32
    %c0_i32_2 = arith.constant 0 : i32
    return %arg0, %c0_i32_1, %2 : i32, i32, i32
  }
  func.func @transform_2(%arg0: i32, %arg1: i32, %arg2: memref<1xi32, #tpu.memory_space<smem>>) -> (i32, i32, i32) {
    %c1_i32 = arith.constant 1 : i32
    %0 = arith.addi %arg1, %c1_i32 : i32
    %c1_i32_0 = arith.constant 1 : i32
    %1 = arith.muli %0, %c1_i32_0 : i32
    %c0_i32 = arith.constant 0 : i32
    %2 = arith.minsi %1, %c0_i32 : i32
    %c0_i32_1 = arith.constant 0 : i32
    %c0_i32_2 = arith.constant 0 : i32
    return %arg0, %c0_i32_1, %2 : i32, i32, i32
  }
  func.func @transform_3(%arg0: i32, %arg1: i32, %arg2: memref<1xi32, #tpu.memory_space<smem>>) -> (i32, i32, i32) {
    %c0_i32 = arith.constant 0 : i32
    %c0_i32_0 = arith.constant 0 : i32
    %c0_i32_1 = arith.constant 0 : i32
    %c0_i32_2 = arith.constant 0 : i32
    return %c0_i32, %c0_i32_0, %c0_i32_1 : i32, i32, i32
  }
  func.func @transform_4(%arg0: i32, %arg1: i32, %arg2: memref<1xi32, #tpu.memory_space<smem>>) -> (i32, i32) {
    %c0_i32 = arith.constant 0 : i32
    %c0_i32_0 = arith.constant 0 : i32
    %c0_i32_1 = arith.constant 0 : i32
    return %c0_i32, %c0_i32_0 : i32, i32
  }
  func.func @transform_5(%arg0: i32, %arg1: i32, %arg2: memref<1xi32, #tpu.memory_space<smem>>) -> (i32, i32, i32) {
    %c0_i32 = arith.constant 0 : i32
    %c0_i32_0 = arith.constant 0 : i32
    return %arg0, %c0_i32, %arg1 : i32, i32, i32
  }
}

</mosaic_0001>

<bundles_post_ra>
// kernel: tpu_custom_call.1
= control target key start
LH: loop header
LB: loop body
LE: loop exit
PB: predicated region body
PF: predicated region fallthrough
CT: control target
= control target key end

     0   :  { %s3881_s0 = inlined_call_operand.<no memory space> [shape: s32[1], index: 0, kind: input, shape index: {}]   ;;  %s3882_s1 = inlined_call_operand.hbm [shape: f32[2,80,128], index: 1, kind: input, shape index: {}]   ;;  %s3883_s2 = inlined_call_operand.hbm [shape: f32[2,80,128], index: 2, kind: input, shape index: {}]   ;;  %s3884_s3 = inlined_call_operand.hbm [shape: f32[2,80,128], index: 3, kind: input, shape index: {}]   ;;  %s3885_s4 = inlined_call_operand.hbm [shape: f32[7,32,80], index: 4, kind: input, shape index: {}]   ;;  %s3886_s5 = inlined_call_operand.vmem [shape: f32[32,1], index: 5, kind: input, shape index: {}]   ;;  %s3887_s6 = inlined_call_operand.hbm [shape: f32[2,32,128], index: 6, kind: output, shape index: {}]  }
   0x1   :  { %3907 = sst [smem:[#allocation22_spill]] %s3882_s1 }
   0x2   :  { %3908 = sst [smem:[#allocation23_spill]] %s3883_s2 }
   0x3   :  { %11 = sst [smem:[#allocation3]] %s3881_s0 }
   0x4   :  { %12 = vsyncpa [#allocation5], 0 }
   0x5   :  { %14 = vsyncpa [#allocation5 + $0x1], 0 }
   0x6   :  { %15 = vsyncpa [#allocation8], 0 }
   0x7   :  { %17 = vsyncpa [#allocation8 + $0x1], 0 }
   0x8   :  { %18 = vsyncpa [#allocation11], 0 }
   0x9   :  { %19 = vsyncpa [#allocation6], 0 }
   0xa   :  { %21 = vsyncpa [#allocation6 + $0x1], 0  ;;  %s2910_s23 = smov 0   ;;  %s2912_s24 = smov 0  }
   0xb   :  { %s2914_s25 = smov 0   ;;  %s2916_s26 = smov 0  }
   0xc   :  { %s2918_s27 = smov 0   ;;  %s2920_s28 = smov 0  }
   0xd LB: > { %3909 = sst [smem:[#allocation17_spill]] %s2840_s25  ;;  %s39_s0 = sadd.s32 1, %s2848_s27  ;;  %s2852_s28 = sphi %s2920_s28, %s27_s28   ;;  %s2848_s27 = sphi %s2918_s27, %s3947_s27   ;;  %s2844_s26 = sphi %s2916_s26, %s3946_s26   ;;  %s2840_s25 = sphi %s2914_s25, %s3945_s25   ;;  %s2836_s24 = sphi %s2912_s24, %s3949_s24   ;;  %s2832_s23 = sphi %s2910_s23, %s3948_s23  }
   0xe   : > { %3910 = sst [smem:[#allocation18_spill]] %s2848_s27  ;;  %s48_s29 = sadd.s32 1, %s2840_s25 }
   0xf   : > { %3911 = sst [smem:[#allocation19_spill]] %s2852_s28  ;;  %p41_p0 = scmp.ge.s32.totalorder %s39_s0, 2 }
  0x10   : > { %p3888_p1 = scmp.ne.s32.totalorder %s2840_s25, %s2836_s24  ;;  %p56_p2 = scmp.eq.s32.totalorder %s2852_s28, 0 }
  0x11   : > { %s3951_s0 = smov (%p41_p0, %s39_s0), 0  ;;  %p2127_p6 = scmp.lt.s32.totalorder %s2852_s28, 2 }
  0x12   : > { %3912 = sst [smem:[#allocation20_spill]] %s3951_s0  ;;  %p57_p3 = por %p56_p2, %p3888_p1 }
  0x13   : > { %s43_s30 = ssub.s32 %s2848_s27, %s3951_s0  ;;  %s3893_s7 = sand.u32 1, %s2840_s25  }
  0x14   : > { %p46_p5 = scmp.eq.s32.totalorder %s43_s30, 0  ;;  %s2956_s8 = smul.u32 1280, %s2848_s27 }
  0x15   : > { %s2963_s10 = smul.u32 80, %s3893_s7  ;;  %p2965_p7 = pnand %p2127_p6, %p57_p3 }
  0x16   : > { %s2959_s9 = scalar_select %p46_p5, %s2840_s25, %s48_s29  }
  0x17   : > { %s3914_s11 = scalar_select %p2965_p7, 1, 0 }
  0x18   : > { %3913 = sst [smem:[#allocation21_spill]] %s2959_s9  ;;  %s261_s12 = sand.u32 1, %s2852_s28  }
  0x19   : > { %s3915_s2 = sld [smem:[#allocation23_spill]]  ;;  %s265_s16 = scalar_lea.vmem [#allocation7], %s2963_s10 }
  0x1a   : > { %s276_s17 = sshll.u32 %s265_s16, 4  ;;  %s2979_s18 = scalar_lea.sflag [#allocation8], %s261_s12  ;;  %s2977_s17 = int_to_ptr.vmem [resolvable:$true] %s276_s17 }
  0x1b   : > { %p2985_p9 = pneg %p2965_p7 }
  0x1d   : > { %s3916_s20 = scalar_select %p2985_p9, 1, 0 }
  0x1f   : > { %s2974_s15 = scalar_lea.hbm %s3915_s2, %s2956_s8  ;;  %s2649_s29 = scalar_lea.hbm %s3915_s2, 2560 }
  0x20   : > { %s2644_s19 = scalar_lea.hbm %s2974_s15, 1280  ;;  %p2650_p12 = scmp.lt.u32.totalorder %s2974_s15, %s3915_s2 }
  0x21   : > { %p2645_p8 = scmp.ne.s32.totalorder %s2974_s15, %s2644_s19  ;;  %p2651_p13 = scmp.lt.u32.totalorder %s2649_s29, %s2644_s19 }
  0x22   : > { %p2653_p2 = scmp.lt.u32.totalorder %s2644_s19, %s2974_s15 }
  0x23   : > { %p2647_p10 = pnand %p2985_p9, %p2645_p8  ;;  %p2652_p0 = por %p2651_p13, %p2650_p12 }
  0x25   : > { %p2648_p11 = pneg %p2647_p10  ;;  %p2654_p3 = por %p2653_p2, %p2652_p0 }
  0x27   : > { %p2655_p5 = pnand %p2654_p3, %p2648_p11 }
  0x29   : > { %2658 = shalt.err (!%p2655_p5)
}
  0x2a   : > { %s2659_s12 = scalar_lea.vmem %s2977_s17, 1280  ;;  %s2854_s14 = smov [#allocation7]  }
  0x2b   : > { %p2660_p6 = scmp.ne.s32.totalorder %s2977_s17, %s2659_s12  ;;  %s2664_s16 = sshll.u32 %s2854_s14, 4  ;;  %s2665_s16 = int_to_ptr.vmem [resolvable:$false] %s2664_s16 }
  0x2c   : > { %s2666_s21 = scalar_lea.vmem %s2665_s16, 2560  ;;  %p2667_p4 = scmp.lt.s32.totalorder %s2977_s17, %s2665_s16 }
  0x2d   : > { %p2662_p8 = pnand %p2660_p6, %p2985_p9  ;;  %p2668_p1 = scmp.lt.s32.totalorder %s2666_s21, %s2659_s12 }
  0x2f   : > { %p2663_p10 = pneg %p2662_p8  ;;  %p2669_p12 = por %p2668_p1, %p2667_p4 }
  0x31   : > { %p2670_p13 = pnand %p2669_p12, %p2663_p10 }
  0x33   : > { %2673 = shalt.err (!%p2670_p13)
}
  0x34   : > { %s3889_s19 = smov 128   ;;  %s3891_s22 = smov 8  }
  0x35   : > { %2118 = dma.hbm_to_vmem [thread:$0]  (!%p2965_p7), %s2974_s15, 1280, %s2977_s17, %s2979_s18, %s3889_s19, %s3889_s19, %s3891_s22  }
  0x36   : > { %s3013_s29 = sadd.s32 4294967295, %s2852_s28   ;;  %s1885_s30 = sadd.s32 4294967294, %s2852_s28  }
  0x37   : > { %p61_p1 = scmp.ne.s32.totalorder %s2836_s24, %s2832_s23  ;;  %p3898_p4 = scmp.eq.s32.totalorder %s3013_s29, 0 }
  0x38   : > { %p197_p11 = scmp.eq.s32.totalorder %s3013_s29, 1  ;;  %p203_p0 = scmp.eq.s32.totalorder %s1885_s30, 1 }
  0x39   : > { %p1886_p2 = scmp.ge.s32.totalorder %s2852_s28, 1  ;;  %p3023_p3 = por %p3898_p4, %p61_p1 }
  0x3a   : > { %p3918_p5 = scmp.ne.s32.totalorder %s2840_s25, %s2836_s24  ;;  %p3034_p8 = por %p203_p0, %p61_p1 }
  0x3b   : > { %s3917_s13 = scalar_select %p3023_p3, 1, 0 }
  0x3c   : > { %p3030_p6 = por %p197_p11, %p3918_p5  ;;  %p210_p10 = scmp.lt.s32.totalorder %s2852_s28, 3 }
  0x3d   : > { %s3920_s17 = scalar_select %p3034_p8, 1, 0 }
  0x3e   : > { %s3919_s15 = scalar_select %p3030_p6, 1, 0 }
  0x3f   : > { %p3039_p12 = pnand %p1886_p2, %p210_p10  ;;  %s2857_s14 = smov [#allocation10]  }
  0x40   : > { %s222_s16 = sshll.u32 %s2857_s14, 4  ;;  %s3922_s1 = sld [smem:[#allocation22_spill]]  ;;  %s3043_s16 = int_to_ptr.vmem [resolvable:$true] %s222_s16 }
  0x41   : > { %s3921_s12 = scalar_select %p3039_p12, 1, 0 }
  0x42   : > { %p2108_p13 = pneg %p3039_p12  ;;  %s243_s22 = scalar_lea.vmem [#allocation4], %s2963_s10 }
  0x43   : > { %s251_s7 = sshll.u32 %s243_s22, 4  ;;  %s3924_s14 = sand.u32 1, %s2840_s25   ;;  %s3060_s7 = int_to_ptr.vmem [resolvable:$true] %s251_s7 }
  0x44   : > { %p3056_p1 = pnand %p2108_p13, %p3898_p4  ;;  %s3064_s0 = scalar_lea.sflag [#allocation5], %s3924_s14 }
  0x46   : > { %s3051_s19 = scalar_lea.hbm %s3922_s1, %s2956_s8  ;;  %s2679_s9 = scalar_lea.hbm %s3922_s1, 2560 }
  0x47   : > { %s3923_s2 = scalar_select %p3056_p1, 1, 0 }
  0x48   : > { %s2674_s27 = scalar_lea.hbm %s3051_s19, 1280  ;;  %p2680_p5 = scmp.lt.u32.totalorder %s3051_s19, %s3922_s1 }
  0x49   : > { %p2675_p11 = scmp.ne.s32.totalorder %s3051_s19, %s2674_s27  ;;  %p2681_p10 = scmp.lt.u32.totalorder %s2679_s9, %s2674_s27 }
  0x4a   : > { %p2683_p4 = scmp.lt.u32.totalorder %s2674_s27, %s3051_s19 }
  0x4b   : > { %p2677_p0 = pnand %p2675_p11, %p2985_p9  ;;  %p2682_p13 = por %p2681_p10, %p2680_p5 }
  0x4d   : > { %p2678_p2 = pneg %p2677_p0  ;;  %p2684_p8 = por %p2683_p4, %p2682_p13 }
  0x4f   : > { %p2685_p6 = pnand %p2684_p8, %p2678_p2 }
  0x51   : > { %2688 = shalt.err (!%p2685_p6)
}
  0x52   : > { %s2689_s14 = scalar_lea.vmem %s3060_s7, 1280  ;;  %s2858_s21 = smov [#allocation4]  }
  0x53   : > { %p2690_p11 = scmp.ne.s32.totalorder %s3060_s7, %s2689_s14  ;;  %s2694_s30 = sshll.u32 %s2858_s21, 4  ;;  %s2695_s30 = int_to_ptr.vmem [resolvable:$false] %s2694_s30 }
  0x54   : > { %s2696_s28 = scalar_lea.vmem %s2695_s30, 2560  ;;  %p2697_p12 = scmp.lt.s32.totalorder %s3060_s7, %s2695_s30 }
  0x55   : > { %p2692_p0 = pnand %p2690_p11, %p2985_p9  ;;  %p2698_p1 = scmp.lt.s32.totalorder %s2696_s28, %s2689_s14 }
  0x57   : > { %p2693_p3 = pneg %p2692_p0  ;;  %p2699_p5 = por %p2698_p1, %p2697_p12 }
  0x59   : > { %p2700_p10 = pnand %p2699_p5, %p2693_p3 }
  0x5b   : > { %2703 = shalt.err (!%p2700_p10)
}
  0x5c   : > { %s3925_s27 = smov 8   ;;  %s3926_s9 = smov 128  }
  0x5d   : > { %2115 = dma.hbm_to_vmem [thread:$0]  (!%p2965_p7), %s3051_s19, 1280, %s3060_s7, %s3064_s0, %s3926_s9, %s3926_s9, %s3925_s27  }
  0x5e   : > { %s2704_s21 = scalar_lea.hbm %s3885_s4, 3584  ;;  %p3927_p3 = scmp.ne.s32.totalorder %s3923_s2, 0 }
  0x5f   : > { %p2705_p4 = scmp.ne.s32.totalorder %s3885_s4, %s2704_s21  ;;  %p2711_p1 = scmp.lt.u32.totalorder %s2704_s21, %s3885_s4 }
  0x60   : > { %p2706_p6 = pneg %p3927_p3 }
  0x62   : > { %p2707_p8 = pnand %p2706_p6, %p2705_p4 }
  0x64   : > { %p2708_p12 = pneg %p2707_p8 }
  0x66   : > { %p2713_p2 = pnand %p2711_p1, %p2708_p12 }
  0x68   : > { %2716 = shalt.err (!%p2713_p2)
}
  0x69   : > { %s2717_s0 = scalar_lea.vmem %s3043_s16, 3584  ;;  %p2725_p5 = scmp.lt.s32.totalorder %s3043_s16, %s3043_s16 }
  0x6a   : > { %p2718_p13 = scmp.ne.s32.totalorder %s3043_s16, %s2717_s0  ;;  %p2726_p10 = scmp.lt.s32.totalorder %s2717_s0, %s2717_s0 }
  0x6c   : > { %p2720_p11 = pnand %p2718_p13, %p2706_p6  ;;  %p2727_p7 = por %p2726_p10, %p2725_p5 }
  0x6e   : > { %p2721_p0 = pneg %p2720_p11 }
  0x70   : > { %p2728_p9 = pnand %p2727_p7, %p2721_p0 }
  0x72   : > { %2731 = shalt.err (!%p2728_p9)
}
  0x73   : > { %2111 = dma.hbm_to_vmem [thread:$0]  (!%p3927_p3), %s3885_s4, 3584, %s3043_s16, [#allocation11], %s3926_s9, %s3926_s9, %s3925_s27  }
  0x74   : > { %s3119_s22 = scalar_lea.hbm %s3884_s3, %s2956_s8  ;;  %s290_s2 = scalar_lea.vmem [#allocation9], %s2963_s10 }
  0x75   : > { %s301_s21 = sshll.u32 %s290_s2, 4  ;;  %s2732_s30 = scalar_lea.hbm %s3119_s22, 1280  ;;  %s3122_s21 = int_to_ptr.vmem [resolvable:$true] %s301_s21 }
  0x76   : > { %p2733_p7 = scmp.ne.s32.totalorder %s3119_s22, %s2732_s30  ;;  %p3928_p9 = scmp.ne.s32.totalorder %s3916_s20, 0 }
  0x77   : > { %s2737_s28 = scalar_lea.hbm %s3884_s3, 2560  ;;  %p2738_p3 = scmp.lt.u32.totalorder %s3119_s22, %s3884_s3 }
  0x78   : > { %p2735_p4 = pnand %p2733_p7, %p3928_p9  ;;  %p2739_p8 = scmp.lt.u32.totalorder %s2737_s28, %s2732_s30 }
  0x79   : > { %p2741_p1 = scmp.lt.u32.totalorder %s2732_s30, %s3119_s22 }
  0x7a   : > { %p2736_p6 = pneg %p2735_p4  ;;  %p2740_p12 = por %p2739_p8, %p2738_p3 }
  0x7c   : > { %p2742_p2 = por %p2741_p1, %p2740_p12 }
  0x7e   : > { %p2743_p13 = pnand %p2742_p2, %p2736_p6 }
  0x80   : > { %2746 = shalt.err (!%p2743_p13)
}
  0x81   : > { %s2747_s10 = scalar_lea.vmem %s3122_s21, 1280  ;;  %s2859_s1 = smov [#allocation9]  }
  0x82   : > { %p2748_p11 = scmp.ne.s32.totalorder %s3122_s21, %s2747_s10  ;;  %s2752_s25 = sshll.u32 %s2859_s1, 4  ;;  %s2753_s25 = int_to_ptr.vmem [resolvable:$false] %s2752_s25 }
  0x83   : > { %s2754_s7 = scalar_lea.vmem %s2753_s25, 2560  ;;  %p2755_p10 = scmp.lt.s32.totalorder %s3122_s21, %s2753_s25 }
  0x84   : > { %p2750_p0 = pnand %p2748_p11, %p3928_p9  ;;  %p2756_p7 = scmp.lt.s32.totalorder %s2754_s7, %s2747_s10 }
  0x86   : > { %p2751_p5 = pneg %p2750_p0  ;;  %p2757_p4 = por %p2756_p7, %p2755_p10 }
  0x88   : > { %p2758_p3 = pnand %p2757_p4, %p2751_p5 }
  0x8a   : > { %2761 = shalt.err (!%p2758_p3)
}
  0x8b   : > { %p3929_p6 = scmp.ne.s32.totalorder %s3914_s11, 0  ;;  %p3930_p9 = scmp.ne.s32.totalorder %s3921_s12, 0 }
  0x8c   : > { %s3152_s20 = sand.u32 (!%p3930_p9), 1, %s2836_s24   ;;  %p3931_p8 = scmp.ne.s32.totalorder (!%p3930_p9), %s3917_s13, 0 }
  0x8d   : > { %2121 = dma.hbm_to_vmem [thread:$0]  (!%p3929_p6), %s3119_s22, 1280, %s3122_s21, %s2979_s18, %s3926_s9, %s3926_s9, %s3925_s27  }
  0x8e   : > { %313 = sbr.rel (%p3930_p9) target bundleno = 700 (0x2bc), region = 40  ;;  %s316_s2 = scalar_lea.sflag (!%p3930_p9), [#allocation5], %s3152_s20 }
  0x8f   : > { %s2095_s19 = smul.u32 (!%p3930_p9), 80, %s3152_s20 }
  0x91   : > { %s3156_s30 = scalar_lea.vmem (!%p3930_p9), [#allocation4], %s2095_s19 }
  0x95   : > { %2815 = dma.done.wait (%p3931_p8), %s316_s2, 1280  }
  0x96   : > { %2817 = vsyncadd (%p3931_p8), %s316_s2, 4294966016  ;;  %s324_s11 = sand.u32 1, %s3013_s29  }
  0x97   : > { %s325_s18 = scalar_lea.sflag [#allocation8], %s324_s11 }
  0x98   : > { %2819 = dma.done.wait (%p3931_p8), %s325_s18, 2560  }
  0x99   : > { %2821 = vsyncadd (%p3931_p8), %s325_s18, 4294964736  ;;  %s3167_s12 = scalar_lea.vmem [#allocation9], %s2095_s19  ;;  %p3932_p12 = scmp.eq.s32.totalorder %s3013_s29, 0 }
  0x9b   : > { %2823 = dma.done.wait (%p3932_p12), [#allocation11], 3584   ;;  %p3933_p1 = pmov %p3932_p12 }
  0x9c   : > { %v384_v0 = vlaneseq  ;;  %s397_s27 = sld [smem:[#allocation3]]  ;;  %v2860_v1 = vmov 0.0   ;;  %s2861_s13 = smov 3   ;;  %v3186_v8 = vld [vmem:[%s3156_s30] sm:$0xff]  ;;  %v3189_v9 = vld [vmem:[%s3156_s30 + $0x8] sm:$0xff]  ;;  %v3212_v18 = vld [vmem:[%s3156_s30 + $0x10] sm:$0xff] }
  0x9d   : > { %2825 = vsyncadd (%p3933_p1), [#allocation11], 4294963712  ;;  %719 = vmatprep.mubr.f32.mxu0 %v2860_v1  ;;  %816 = vmatprep.mubr.f32.mxu1 %v2860_v1  ;;  %v425_v12 = vld [vmem:[%s3167_s12] sm:$0xff]  ;;  %v426_v13 = vld [vmem:[%s3167_s12 + $0x8] sm:$0xff]  ;;  %s2862_s29 = smov 2   ;;  %s2863_s9 = smov 1   ;;  %v1999_v60 = vpack.c.bf16 %v3189_v9, %v3186_v8 }
  0x9e   : > { %v3174_v2 = vand.u32 127, %v384_v0  ;;  %2193 = vrot.lane.b32.xlu0 %v2860_v1, %s2861_s13  ;;  %2203 = vrot.lane.b32.xlu1 %v2860_v1, %s2861_s13  ;;  %v3215_v19 = vld [vmem:[%s3156_s30 + $0x18] sm:$0xff]  ;;  %v427_v24 = vld [vmem:[%s3167_s12 + $0x10] sm:$0xff]  ;;  %s2864_s22 = smov 127   ;;  %s2865_s21 = smov 126   ;;  %vm642_vm6 = vcmask 654336  }
  0x9f   : > { %v428_v25 = vld [vmem:[%s3167_s12 + $0x18] sm:$0xff]  ;;  %v3242_v29 = vld [vmem:[%s3156_s30 + $0x20] sm:$0xff]  ;;  %v3245_v30 = vld [vmem:[%s3156_s30 + $0x28] sm:$0xff]  ;;  %s2866_s14 = smov 125   ;;  %s1894_s19 = sshll.u32 %s3152_s20, 5 }
  0xa0   : > { %v386_v3 = vadd.s32 128, %v3174_v2  ;;  %v387_v4 = vadd.s32 256, %v3174_v2  ;;  %v429_v31 = vld [vmem:[%s3167_s12 + $0x20] sm:$0xff]  ;;  %v430_v32 = vld [vmem:[%s3167_s12 + $0x28] sm:$0xff]  ;;  %v3252_v33 = vld [vmem:[%s3156_s30 + $0x30] sm:$0xff]  ;;  %vm535_vm2 = vcmp.lt.s32.totalorder %v3174_v2, 3 }
  0xa1   : > { %v3255_v34 = vld [vmem:[%s3156_s30 + $0x38] sm:$0xff]  ;;  %v431_v35 = vld [vmem:[%s3167_s12 + $0x30] sm:$0xff]  ;;  %v3262_v38 = vld [vmem:[%s3156_s30 + $0x40] sm:$0xff]  ;;  %vm621_vm3 = vcmp.lt.s32.totalorder %v3174_v2, 2  ;;  %vm902_vm5 = vcmp.lt.s32.totalorder %v3174_v2, 1  ;;  %vm1195_vm7 = vcmp.lt.s32.totalorder %v3174_v2, 127 }
  0xa2   : > { %v392_v5 = vadd.s32 4294967168, %v386_v3  ;;  %v393_v6 = vadd.s32 4294967168, %v387_v4  ;;  %2198 = vrot.lane.b32.xlu0 %v2860_v1, %s2861_s13  ;;  %v398_v7 = vstv %s397_s27  ;;  %v432_v36 = vld [vmem:[%s3167_s12 + $0x38] sm:$0xff]  ;;  %v3265_v39 = vld [vmem:[%s3156_s30 + $0x48] sm:$0xff]  ;;  %vm1382_vm8 = vcmp.lt.s32.totalorder %v3174_v2, 126  ;;  %s377_s2 = scalar_lea.vmem [#allocation12], %s1894_s19 }
  0xa3   : > { %v433_v50 = vld [vmem:[%s3167_s12 + $0x40] sm:$0xff]  ;;  %v434_v51 = vld [vmem:[%s3167_s12 + $0x48] sm:$0xff]  ;;  %vm1569_vm9 = vcmp.lt.s32.totalorder %v3174_v2, 125  ;;  %s1742_s30 = sshll.u32 %s377_s2, 4  ;;  %s1938_s11 = sshll.u32 %s2844_s26, 9  ;;  %s3823_s30 = int_to_ptr.vmem [resolvable:$true] %s1742_s30 }
  0xa4   : > { %vm3191_vm0 = vcmp.lt.s32.totalorder %v392_v5, %v398_v7  ;;  %vm3195_vm1 = vcmp.lt.s32.totalorder %v393_v6, %v398_v7  ;;  %s3828_s12 = scalar_lea.hbm %s3887_s6, %s1938_s11  ;;  %s1728_s27 = scalar_lea.sflag [#allocation6], %s3152_s20 }
  0xa5   : > { %v442_v14 = vsel %vm3191_vm0, %v3186_v8, 0.0  ;;  %v445_v15 = vsel %vm3191_vm0, %v3189_v9, 0.0  ;;  %v443_v16 = vsel %vm3195_vm1, %v425_v12, 0.0  ;;  %v446_v17 = vsel %vm3195_vm1, %v426_v13, 0.0  ;;  %vm3547_vm4 = vmpackc.low %vm3191_vm0, %vm3191_vm0  ;;  %v472_v8 = vld [vmem:[#allocation10 + $0x8] sm:$0xff]  ;;  %p3940_p13 = scmp.ne.s32.totalorder %s3919_s15, 0 }
  0xa6   : > { %v3217_v20 = vpack.i.bf16 %v445_v15, %v442_v14  ;;  %2208 = vrot.lane.b32.xlu0 %v2860_v1, %s2862_s29  ;;  %v3221_v21 = vpack.i.bf16 %v446_v17, %v443_v16  ;;  %v448_v22 = vsel %vm3191_vm0, %v3212_v18, 0.0  ;;  %v451_v23 = vsel %vm3191_vm0, %v3215_v19, 0.0 }
  0xa7   : > { %v3235_v26 = vpack.i.bf16 %v451_v23, %v448_v22  ;;  %v449_v27 = vsel %vm3195_vm1, %v427_v24, 0.0  ;;  %v452_v28 = vsel %vm3195_vm1, %v428_v25, 0.0  ;;  %v454_v40 = vsel %vm3191_vm0, %v3242_v29, 0.0 }
  0xa8   : > { %2213 = vrot.lane.b32.xlu1 %v3217_v20, %s2861_s13  ;;  %v3259_v37 = vpack.i.bf16 %v452_v28, %v449_v27  ;;  %v457_v41 = vsel %vm3191_vm0, %v3245_v30, 0.0  ;;  %v455_v42 = vsel %vm3195_vm1, %v429_v31, 0.0  ;;  %v458_v43 = vsel %vm3195_vm1, %v430_v32, 0.0 }
  0xa9   : > { %v460_v44 = vsel %vm3191_vm0, %v3252_v33, 0.0  ;;  %v463_v45 = vsel %vm3191_vm0, %v3255_v34, 0.0  ;;  %v461_v46 = vsel %vm3195_vm1, %v431_v35, 0.0  ;;  %v464_v47 = vsel %vm3195_vm1, %v432_v36, 0.0 }
  0xaa   : > { %2223 = vrot.lane.b32.xlu0 %v3221_v21, %s2861_s13  ;;  %v466_v48 = vsel %vm3191_vm0, %v3262_v38, 0.0  ;;  %v469_v49 = vsel %vm3191_vm0, %v3265_v39, 0.0  ;;  %v3301_v52 = vpack.i.bf16 %v458_v43, %v455_v42  ;;  %v3303_v53 = vpack.i.bf16 %v457_v41, %v454_v40 }
  0xab   : > { %v3307_v54 = vpack.i.bf16 %v464_v47, %v461_v46  ;;  %v3309_v55 = vpack.i.bf16 %v463_v45, %v460_v44  ;;  %v467_v56 = vsel %vm3195_vm1, %v433_v50, 0.0  ;;  %v470_v57 = vsel %vm3195_vm1, %v434_v51, 0.0 }
  0xac   : > { %2218 = vrot.lane.b32.xlu1 %v3217_v20, %s2862_s29  ;;  %v3315_v58 = vpack.i.bf16 %v470_v57, %v467_v56  ;;  %v3317_v59 = vpack.i.bf16 %v469_v49, %v466_v48 }
  0xae   : > { %2233 = vrot.lane.b32.xlu0 %v3235_v26, %s2861_s13 }
  0xb0   : > { %2228 = vrot.lane.b32.xlu1 %v3221_v21, %s2862_s29 }
  0xb2   : > { %2243 = vrot.lane.b32.xlu0 %v3235_v26, %s2862_s29 }
  0xb4   : > { %2238 = vrot.lane.b32.xlu1 %v2860_v1, %s2862_s29 }
  0xb6   : > { %2253 = vrot.lane.b32.xlu0 %v3259_v37, %s2862_s29 }
  0xb8   : > { %2248 = vrot.lane.b32.xlu1 %v3259_v37, %s2861_s13 }
  0xba   : > { %2263 = vrot.lane.b32.xlu0 %v2860_v1, %s2862_s29 }
  0xbc   : > { %2258 = vrot.lane.b32.xlu1 %v3303_v53, %s2861_s13 }
  0xbe   : > { %2273 = vrot.lane.b32.xlu0 %v3301_v52, %s2861_s13 }
  0xc0   : > { %2268 = vrot.lane.b32.xlu1 %v3303_v53, %s2862_s29 }
  0xc2   : > { %2283 = vrot.lane.b32.xlu0 %v2860_v1, %s2861_s13 }
  0xc4   : > { %2278 = vrot.lane.b32.xlu1 %v3301_v52, %s2862_s29 }
  0xc6   : > { %2293 = vrot.lane.b32.xlu0 %v2860_v1, %s2862_s29 }
  0xc8   : > { %2288 = vrot.lane.b32.xlu1 %v3309_v55, %s2861_s13 }
  0xca   : > { %2303 = vrot.lane.b32.xlu0 %v3307_v54, %s2861_s13 }
  0xcc   : > { %2298 = vrot.lane.b32.xlu1 %v3309_v55, %s2862_s29 }
  0xce   : > { %2313 = vrot.lane.b32.xlu0 %v2860_v1, %s2861_s13 }
  0xd0   : > { %2308 = vrot.lane.b32.xlu1 %v3307_v54, %s2862_s29 }
  0xd2   : > { %2323 = vrot.lane.b32.xlu0 %v2860_v1, %s2862_s29 }
  0xd4   : > { %2318 = vrot.lane.b32.xlu1 %v3317_v59, %s2861_s13 }
  0xd6   : > { %2333 = vrot.lane.b32.xlu0 %v3315_v58, %s2861_s13  ;;  %s2762_s13 = scalar_lea.vmem %s3823_s30, 512 }
  0xd7   : > { %p2763_p2 = scmp.ne.s32.totalorder %s3823_s30, %s2762_s13 }
  0xd8   : > { %2328 = vrot.lane.b32.xlu1 %v3317_v59, %s2862_s29 }
  0xd9   : > { %p2764_p11 = pnand %p2763_p2, %p3940_p13 }
  0xda   : > { %2343 = vrot.lane.b32.xlu0 %v2860_v1, %s2863_s9 }
  0xdb   : > { %p2765_p0 = pneg %p2764_p11 }
  0xdc   : > { %2338 = vrot.lane.b32.xlu1 %v3315_v58, %s2862_s29  ;;  %s2869_s29 = smov [#allocation12]  }
  0xde   : > { %2353 = vrot.lane.b32.xlu0 %v3221_v21, %s2863_s9 }
  0xe0   : > { %2348 = vrot.lane.b32.xlu1 %v3217_v20, %s2863_s9 }
  0xe2   : > { %2363 = vrot.lane.b32.xlu0 %v3235_v26, %s2863_s9 }
  0xe4   : > { %2358 = vrot.lane.b32.xlu1 %v2860_v1, %s2863_s9 }
  0xe6   : > { %2373 = vrot.lane.b32.xlu0 %v2860_v1, %s2863_s9 }
  0xe8   : > { %2368 = vrot.lane.b32.xlu1 %v3259_v37, %s2863_s9 }
  0xea   : > { %2383 = vrot.lane.b32.xlu0 %v3301_v52, %s2863_s9 }
  0xec   : > { %2378 = vrot.lane.b32.xlu1 %v3303_v53, %s2863_s9 }
  0xee   : > { %2393 = vrot.lane.b32.xlu0 %v3309_v55, %s2863_s9 }
  0xf0   : > { %2388 = vrot.lane.b32.xlu1 %v2860_v1, %s2863_s9 }
  0xf2   : > { %2403 = vrot.lane.b32.xlu0 %v2860_v1, %s2863_s9 }
  0xf4   : > { %2398 = vrot.lane.b32.xlu1 %v3307_v54, %s2863_s9 }
  0xf6   : > { %2413 = vrot.lane.b32.xlu0 %v3315_v58, %s2863_s9 }
  0xf8   : > { %2408 = vrot.lane.b32.xlu1 %v3317_v59, %s2863_s9  ;;  %s2766_s9 = sshll.u32 %s2869_s29, 4  ;;  %s2767_s9 = int_to_ptr.vmem [resolvable:$false] %s2766_s9 }
  0xf9   : > { %p2769_p5 = scmp.lt.s32.totalorder %s3823_s30, %s2767_s9 }
  0xfa   : > { %2423 = vrot.lane.b32.xlu0 %v3221_v21, %s2864_s22 }
  0xfc   : > { %2418 = vrot.lane.b32.xlu1 %v3217_v20, %s2864_s22 }
  0xfe   : > { %2433 = vrot.lane.b32.xlu0 %v3221_v21, %s2865_s21 }
 0x100   : > { %2428 = vrot.lane.b32.xlu1 %v3217_v20, %s2865_s21 }
 0x102   : > { %2443 = vrot.lane.b32.xlu0 %v2860_v1, %s2865_s21 }
 0x104   : > { %2438 = vrot.lane.b32.xlu1 %v2860_v1, %s2864_s22 }
 0x106   : > { %2453 = vrot.lane.b32.xlu0 %v3259_v37, %s2864_s22 }
 0x108   : > { %2448 = vrot.lane.b32.xlu1 %v3235_v26, %s2864_s22 }
 0x10a   : > { %2463 = vrot.lane.b32.xlu0 %v3259_v37, %s2865_s21 }
 0x10c   : > { %2458 = vrot.lane.b32.xlu1 %v3235_v26, %s2865_s21 }
 0x10e   : > { %2473 = vrot.lane.b32.xlu0 %v2860_v1, %s2865_s21 }
 0x110   : > { %2468 = vrot.lane.b32.xlu1 %v2860_v1, %s2864_s22  ;;  %v2194_v61 = vpop.permute.xlu0 %2193  ;;  %v3402_v62 = vpop.permute.xlu1 %2203 }
 0x111   : > { %v2196_v4 = vunpack.i.h.bf16 %v2194_v61  ;;  %v2195_v5 = vunpack.i.l.bf16 %v2194_v61 }
 0x112   : > { %2483 = vrot.lane.b32.xlu0 %v3301_v52, %s2864_s22 }
 0x114   : > { %2478 = vrot.lane.b32.xlu1 %v3303_v53, %s2864_s22  ;;  %v3404_v63 = vpop.permute.xlu0 %2198 }
 0x115   : > { %v2201_v31 = vunpack.i.h.bf16 %v3404_v63  ;;  %v2200_v41 = vunpack.i.l.bf16 %v3404_v63 }
 0x116   : > { %2493 = vrot.lane.b32.xlu0 %v3301_v52, %s2865_s21 }
 0x118   : > { %2488 = vrot.lane.b32.xlu1 %v3303_v53, %s2865_s21  ;;  %v2209_v0 = vpop.permute.xlu0 %2208 }
 0x119   : > { %v2211_v11 = vunpack.i.h.bf16 %v2209_v0  ;;  %v2210_v12 = vunpack.i.l.bf16 %v2209_v0 }
 0x11a   : > { %v2214_v3 = vpop.permute.xlu1 %2213  ;;  %2503 = vrot.lane.b32.xlu0 %v2860_v1, %s2865_s21 }
 0x11b   : > { %v2216_v6 = vunpack.i.h.bf16 %v2214_v3  ;;  %v2215_v7 = vunpack.i.l.bf16 %v2214_v3 }
 0x11c   : > { %2498 = vrot.lane.b32.xlu1 %v2860_v1, %s2864_s22  ;;  %v2224_v13 = vpop.permute.xlu0 %2223 }
 0x11d   : > { %v536_v14 = vsel %vm535_vm2, %v2195_v5, %v2215_v7  ;;  %v537_v15 = vsel %vm535_vm2, %v2196_v4, %v2216_v6  ;;  %v2226_v16 = vunpack.i.h.bf16 %v2224_v13  ;;  %v2225_v17 = vunpack.i.l.bf16 %v2224_v13 }
 0x11e   : > { %v2219_v22 = vpop.permute.xlu1 %2218  ;;  %v1959_v23 = vpack.c.bf16 %v537_v15, %v536_v14  ;;  %2513 = vrot.lane.b32.xlu0 %v3307_v54, %s2864_s22 }
 0x11f   : > { %v2221_v24 = vunpack.i.h.bf16 %v2219_v22  ;;  %v2220_v25 = vunpack.i.l.bf16 %v2219_v22  ;;  %v546_v27 = vsel %vm535_vm2, %v2225_v17, %v2195_v5  ;;  %v547_v28 = vsel %vm535_vm2, %v2226_v16, %v2196_v4 }
 0x120   : > { %2508 = vrot.lane.b32.xlu1 %v3309_v55, %s2864_s22  ;;  %1960 = vmatprep.subr.bf16.mxu1 %v1959_v23  ;;  %v2234_v32 = vpop.permute.xlu0 %2233  ;;  %v1961_v35 = vpack.c.bf16 %v547_v28, %v546_v27 }
 0x121   : > { %v622_v36 = vsel %vm621_vm3, %v2210_v12, %v2220_v25  ;;  %v623_v40 = vsel %vm621_vm3, %v2211_v11, %v2221_v24  ;;  %v2236_v42 = vunpack.i.h.bf16 %v2234_v32  ;;  %v2235_v43 = vunpack.i.l.bf16 %v2234_v32 }
 0x122   : > { %v2229_v44 = vpop.permute.xlu1 %2228  ;;  %v1939_v45 = vpack.c.bf16 %v623_v40, %v622_v36  ;;  %2523 = vrot.lane.b32.xlu0 %v3307_v54, %s2865_s21  ;;  %1962 = vmatpush1.bf16.msra.mxu1 %v1961_v35  ;;  %v2206_v36 = vunpack.i.h.bf16 %v3402_v62  ;;  %v2205_v40 = vunpack.i.l.bf16 %v3402_v62 }
 0x123   : > { %v2231_v46 = vunpack.i.h.bf16 %v2229_v44  ;;  %v2230_v47 = vunpack.i.l.bf16 %v2229_v44  ;;  %v538_v48 = vsel %vm535_vm2, %v2200_v41, %v2235_v43  ;;  %v539_v49 = vsel %vm535_vm2, %v2201_v31, %v2236_v42 }
 0x124   : > { %2518 = vrot.lane.b32.xlu1 %v3309_v55, %s2865_s21  ;;  %1940 = vmatprep.subr.bf16.mxu0 %v1939_v45  ;;  %v2244_v50 = vpop.permute.xlu0 %2243  ;;  %v1963_v51 = vpack.c.bf16 %v539_v49, %v538_v48 }
 0x125   : > { %v632_v56 = vsel %vm621_vm3, %v2230_v47, %v2210_v12  ;;  %v633_v57 = vsel %vm621_vm3, %v2231_v46, %v2211_v11  ;;  %v2246_v61 = vunpack.i.h.bf16 %v2244_v50  ;;  %v2245_v63 = vunpack.i.l.bf16 %v2244_v50 }
 0x126   : > { %v2239_v0 = vpop.permute.xlu1 %2238  ;;  %v1941_v3 = vpack.c.bf16 %v633_v57, %v632_v56  ;;  %2533 = vrot.lane.b32.xlu0 %v2860_v1, %s2865_s21  ;;  %1964 = vmatprep.subr.bf16.mxu1 %v1963_v51 }
 0x127   : > { %v2241_v4 = vunpack.i.h.bf16 %v2239_v0  ;;  %v2240_v5 = vunpack.i.l.bf16 %v2239_v0 }
 0x128   : > { %2528 = vrot.lane.b32.xlu1 %v2860_v1, %s2864_s22  ;;  %1942 = vmatpush1.bf16.msra.mxu0 %v1941_v3  ;;  %v2254_v6 = vpop.permute.xlu0 %2253 }
 0x129   : > { %v624_v7 = vsel %vm621_vm3, %v2240_v5, %v2245_v63  ;;  %v625_v11 = vsel %vm621_vm3, %v2241_v4, %v2246_v61  ;;  %v2256_v12 = vunpack.i.h.bf16 %v2254_v6  ;;  %v2255_v13 = vunpack.i.l.bf16 %v2254_v6 }
 0x12a   : > { %v2249_v14 = vpop.permute.xlu1 %2248  ;;  %v1943_v15 = vpack.c.bf16 %v625_v11, %v624_v7  ;;  %2543 = vrot.lane.b32.xlu0 %v3315_v58, %s2864_s22 }
 0x12b   : > { %v2251_v16 = vunpack.i.h.bf16 %v2249_v14  ;;  %v2250_v17 = vunpack.i.l.bf16 %v2249_v14  ;;  %v634_v22 = vsel %vm621_vm3, %v2255_v13, %v2240_v5  ;;  %v635_v23 = vsel %vm621_vm3, %v2256_v12, %v2241_v4 }
 0x12c   : > { %2538 = vrot.lane.b32.xlu1 %v3317_v59, %s2864_s22  ;;  %1944 = vmatprep.subr.bf16.mxu0 %v1943_v15  ;;  %v2264_v24 = vpop.permute.xlu0 %2263  ;;  %v1945_v25 = vpack.c.bf16 %v635_v23, %v634_v22 }
 0x12d   : > { %v548_v27 = vsel %vm535_vm2, %v2250_v17, %v2200_v41  ;;  %v549_v28 = vsel %vm535_vm2, %v2251_v16, %v2201_v31  ;;  %v2266_v41 = vunpack.i.h.bf16 %v2264_v24  ;;  %v2265_v44 = vunpack.i.l.bf16 %v2264_v24 }
 0x12e   : > { %v2259_v32 = vpop.permute.xlu1 %2258  ;;  %v1965_v35 = vpack.c.bf16 %v549_v28, %v548_v27  ;;  %2553 = vrot.lane.b32.xlu0 %v3315_v58, %s2865_s21  ;;  %1946 = vmatpush1.bf16.msra.mxu0 %v1945_v25 }
 0x12f   : > { %v2261_v42 = vunpack.i.h.bf16 %v2259_v32  ;;  %v2260_v43 = vunpack.i.l.bf16 %v2259_v32 }
 0x130   : > { %2548 = vrot.lane.b32.xlu1 %v3317_v59, %s2865_s21  ;;  %1966 = vmatpush1.bf16.msra.mxu1 %v1965_v35  ;;  %v2274_v45 = vpop.permute.xlu0 %2273 }
 0x131   : > { %v540_v31 = vsel %vm535_vm2, %v2205_v40, %v2260_v43  ;;  %v541_v46 = vsel %vm535_vm2, %v2206_v36, %v2261_v42  ;;  %v2276_v62 = vunpack.i.h.bf16 %v2274_v45  ;;  %v2275_v47 = vunpack.i.l.bf16 %v2274_v45 }
 0x132   : > { %v2269_v48 = vpop.permute.xlu1 %2268  ;;  %v1967_v49 = vpack.c.bf16 %v541_v46, %v540_v31  ;;  %2563 = vrot.lane.b32.xlu0 %v2860_v1, %s2865_s21 }
 0x133   : > { %v2271_v50 = vunpack.i.h.bf16 %v2269_v48  ;;  %v2270_v51 = vunpack.i.l.bf16 %v2269_v48  ;;  %v550_v56 = vsel %vm535_vm2, %v2275_v47, %v2205_v40  ;;  %v551_v57 = vsel %vm535_vm2, %v2276_v62, %v2206_v36 }
 0x134   : > { %2558 = vrot.lane.b32.xlu1 %v2860_v1, %s2864_s22  ;;  %1968 = vmatprep.subr.bf16.mxu1 %v1967_v49  ;;  %v2284_v61 = vpop.permute.xlu0 %2283  ;;  %v1969_v63 = vpack.c.bf16 %v551_v57, %v550_v56  ;;  %s2768_s22 = scalar_lea.vmem %s2767_s9, 1024 }
 0x135   : > { %v626_v0 = vsel %vm621_vm3, %v2265_v44, %v2270_v51  ;;  %v627_v3 = vsel %vm621_vm3, %v2266_v41, %v2271_v50  ;;  %v2286_v11 = vunpack.i.h.bf16 %v2284_v61  ;;  %v2285_v12 = vunpack.i.l.bf16 %v2284_v61  ;;  %p2770_p10 = scmp.lt.s32.totalorder %s2768_s22, %s2762_s13 }
 0x136   : > { %v2279_v4 = vpop.permute.xlu1 %2278  ;;  %v1947_v5 = vpack.c.bf16 %v627_v3, %v626_v0  ;;  %2573 = vrot.lane.b32.xlu0 %v3221_v21, %s2866_s14  ;;  %1970 = vmatpush1.bf16.msra.mxu1 %v1969_v63 }
 0x137   : > { %v2281_v6 = vunpack.i.h.bf16 %v2279_v4  ;;  %v2280_v7 = vunpack.i.l.bf16 %v2279_v4  ;;  %p2771_p7 = por %p2770_p10, %p2769_p5 }
 0x138   : > { %2568 = vrot.lane.b32.xlu1 %v3217_v20, %s2866_s14  ;;  %1948 = vmatprep.subr.bf16.mxu0 %v1947_v5  ;;  %v2294_v13 = vpop.permute.xlu0 %2293 }
 0x139   : > { %v636_v14 = vsel %vm621_vm3, %v2280_v7, %v2265_v44  ;;  %v637_v15 = vsel %vm621_vm3, %v2281_v6, %v2266_v41  ;;  %v2296_v20 = vunpack.i.h.bf16 %v2294_v13  ;;  %v2295_v21 = vunpack.i.l.bf16 %v2294_v13  ;;  %p2772_p4 = pnand %p2771_p7, %p2765_p0 }
 0x13a   : > { %v2289_v16 = vpop.permute.xlu1 %2288  ;;  %v1949_v17 = vpack.c.bf16 %v637_v15, %v636_v14  ;;  %2583 = vrot.lane.b32.xlu0 %v3235_v26, %s2866_s14 }
 0x13b   : > { %v2291_v22 = vunpack.i.h.bf16 %v2289_v16  ;;  %v2290_v23 = vunpack.i.l.bf16 %v2289_v16 }
 0x13c   : > { %2578 = vrot.lane.b32.xlu1 %v2860_v1, %s2866_s14  ;;  %1950 = vmatpush1.bf16.msra.mxu0 %v1949_v17  ;;  %v2304_v24 = vpop.permute.xlu0 %2303 }
 0x13d   : > { %v542_v25 = vsel %vm535_vm2, %v2285_v12, %v2290_v23  ;;  %v543_v27 = vsel %vm535_vm2, %v2286_v11, %v2291_v22  ;;  %v2306_v28 = vunpack.i.h.bf16 %v2304_v24  ;;  %v2305_v32 = vunpack.i.l.bf16 %v2304_v24 }
 0x13e   : > { %v2299_v35 = vpop.permute.xlu1 %2298  ;;  %v1971_v36 = vpack.c.bf16 %v543_v27, %v542_v25  ;;  %2593 = vrot.lane.b32.xlu0 %v2860_v1, %s2866_s14  ;;  %v471_v27 = vld [vmem:[#allocation10] sm:$0xff] }
 0x13f   : > { %v2301_v40 = vunpack.i.h.bf16 %v2299_v35  ;;  %v2300_v42 = vunpack.i.l.bf16 %v2299_v35  ;;  %v552_v26 = vsel %vm535_vm2, %v2305_v32, %v2285_v12  ;;  %v553_v43 = vsel %vm535_vm2, %v2306_v28, %v2286_v11 }
 0x140   : > { %2588 = vrot.lane.b32.xlu1 %v3259_v37, %s2866_s14  ;;  %1972 = vmatprep.subr.bf16.mxu1 %v1971_v36  ;;  %v2314_v41 = vpop.permute.xlu0 %2313  ;;  %v1973_v44 = vpack.c.bf16 %v553_v43, %v552_v26 }
 0x141   : > { %v628_v45 = vsel %vm621_vm3, %v2295_v21, %v2300_v42  ;;  %v629_v31 = vsel %vm621_vm3, %v2296_v20, %v2301_v40  ;;  %v2316_v37 = vunpack.i.h.bf16 %v2314_v41  ;;  %v2315_v49 = vunpack.i.l.bf16 %v2314_v41 }
 0x142   : > { %v2309_v46 = vpop.permute.xlu1 %2308  ;;  %v1951_v62 = vpack.c.bf16 %v629_v31, %v628_v45  ;;  %2603 = vrot.lane.b32.xlu0 %v3301_v52, %s2866_s14  ;;  %1974 = vmatpush1.bf16.msra.mxu1 %v1973_v44  ;;  %v2867_v45 = vmov 0.0|0.0  }
 0x143   : > { %v2311_v47 = vunpack.i.h.bf16 %v2309_v46  ;;  %v2310_v48 = vunpack.i.l.bf16 %v2309_v46 }
 0x144   : > { %2598 = vrot.lane.b32.xlu1 %v3303_v53, %s2866_s14  ;;  %1952 = vmatprep.subr.bf16.mxu0 %v1951_v62  ;;  %v2324_v50 = vpop.permute.xlu0 %2323 }
 0x145   : > { %v638_v51 = vsel %vm621_vm3, %v2310_v48, %v2295_v21  ;;  %v639_v56 = vsel %vm621_vm3, %v2311_v47, %v2296_v20  ;;  %v2326_v52 = vunpack.i.h.bf16 %v2324_v50  ;;  %v2325_v53 = vunpack.i.l.bf16 %v2324_v50 }
 0x146   : > { %v2319_v57 = vpop.permute.xlu1 %2318  ;;  %v1953_v61 = vpack.c.bf16 %v639_v56, %v638_v51  ;;  %2613 = vrot.lane.b32.xlu0 %v3309_v55, %s2866_s14  ;;  %v2868_v47 = vmov 0   ;;  %v1691_v56 = vld [vmem:[%s3886_s5] sm:$0xff] }
 0x147   : > { %v2321_v63 = vunpack.i.h.bf16 %v2319_v57  ;;  %v2320_v0 = vunpack.i.l.bf16 %v2319_v57  ;;  %2643 = vset.pattern.permute.xlu1 %v2868_v47  ;;  %2642 = vset.pattern.permute.xlu0 %v2868_v47  ;;  %v558_v57 = vld [vmem:[#allocation10 + $0x28] sm:$0xff] }
 0x148   : > { %2608 = vrot.lane.b32.xlu1 %v2860_v1, %s2866_s14  ;;  %1954 = vmatpush1.bf16.msra.mxu0 %v1953_v61  ;;  %v2334_v3 = vpop.permute.xlu0 %2333  ;;  %v2011_v61 = vpack.c.bf16 %v3255_v34, %v3252_v33  ;;  %v1692_v33 = vld [vmem:[%s3886_s5 + $0x8] sm:$0xff] }
 0x149   : > { %v544_v4 = vsel %vm535_vm2, %v2315_v49, %v2320_v0  ;;  %v545_v5 = vsel %vm535_vm2, %v2316_v37, %v2321_v63  ;;  %v2336_v6 = vunpack.i.h.bf16 %v2334_v3  ;;  %v2335_v7 = vunpack.i.l.bf16 %v2334_v3 }
 0x14a   : > { %v2329_v11 = vpop.permute.xlu1 %2328  ;;  %v1975_v12 = vpack.c.bf16 %v545_v5, %v544_v4  ;;  %2623 = vrot.lane.b32.xlu0 %v2860_v1, %s2866_s14  ;;  %v473_v4 = vld [vmem:[#allocation10 + $0x10] sm:$0xff] }
 0x14b   : > { %v2331_v13 = vunpack.i.h.bf16 %v2329_v11  ;;  %v2330_v14 = vunpack.i.l.bf16 %v2329_v11  ;;  %v554_v55 = vsel %vm535_vm2, %v2335_v7, %v2315_v49  ;;  %v555_v15 = vsel %vm535_vm2, %v2336_v6, %v2316_v37  ;;  %v559_v11 = vld [vmem:[#allocation10 + $0x30] sm:$0xff] }
 0x14c   : > { %2618 = vrot.lane.b32.xlu1 %v3307_v54, %s2866_s14  ;;  %1976 = vmatprep.subr.bf16.mxu1 %v1975_v12  ;;  %v2344_v16 = vpop.permute.xlu0 %2343  ;;  %v1977_v17 = vpack.c.bf16 %v555_v15, %v554_v55  ;;  %v2015_v12 = vpack.c.bf16 %v3265_v39, %v3262_v38  ;;  %v1693_v54 = vld [vmem:[%s3886_s5 + $0x10] sm:$0xff] }
 0x14d   : > { %v630_v22 = vsel %vm621_vm3, %v2325_v53, %v2330_v14  ;;  %v631_v23 = vsel %vm621_vm3, %v2326_v52, %v2331_v13  ;;  %v2346_v28 = vunpack.i.h.bf16 %v2344_v16  ;;  %v2345_v32 = vunpack.i.l.bf16 %v2344_v16 }
 0x14e   : > { %v2339_v20 = vpop.permute.xlu1 %2338  ;;  %v1955_v21 = vpack.c.bf16 %v631_v23, %v630_v22  ;;  %1978 = vmatpush1.bf16.msra.mxu1 %v1977_v17  ;;  %2633 = vrot.lane.b32.xlu0 %v3315_v58, %s2866_s14  ;;  %v2003_v58 = vpack.c.bf16 %v3215_v19, %v3212_v18  ;;  %v557_v19 = vld [vmem:[#allocation10 + $0x20] sm:$0xff]  ;;  %v474_v23 = vld [vmem:[#allocation10 + $0x18] sm:$0xff] }
 0x14f   : > { %v2341_v24 = vunpack.i.h.bf16 %v2339_v20  ;;  %v2340_v25 = vunpack.i.l.bf16 %v2339_v20  ;;  %2001 = vmatprep.subr.msk.bf16.mxu1 %vm3547_vm4, %v1999_v60  ;;  %v2007_v60 = vpack.c.bf16 %v3245_v30, %v3242_v29  ;;  %v1694_v20 = vld [vmem:[%s3886_s5 + $0x18] sm:$0xff] }
 0x150   : > { %2628 = vrot.lane.b32.xlu1 %v3317_v59, %s2866_s14  ;;  %1956 = vmatprep.subr.bf16.mxu0 %v1955_v21  ;;  %v2354_v35 = vpop.permute.xlu0 %2353 }
 0x151   : > { %v640_v36 = vsel %vm621_vm3, %v2340_v25, %v2325_v53  ;;  %v641_v40 = vsel %vm621_vm3, %v2341_v24, %v2326_v52  ;;  %v2356_v42 = vunpack.i.h.bf16 %v2354_v35  ;;  %v2355_v59 = vunpack.i.l.bf16 %v2354_v35  ;;  %1899 = vmatmul.mubr.msk.f32.vlgmr.msra.gmra.mrb[0].mxu1 %vm642_vm6, %v471_v27  ;;  %v560_v25 = vld [vmem:[#allocation10 + $0x38] sm:$0xff] }
 0x152   : > { %v2349_v26 = vpop.permute.xlu1 %2348  ;;  %v1957_v43 = vpack.c.bf16 %v641_v40, %v640_v36  ;;  %2002 = vmatpush1.bf16.msra.mxu1 %v2867_v45  ;;  %821 = vmatprep.mubr.f32.mxu1 %v2860_v1 }
 0x153   : > { %v2351_v41 = vunpack.i.h.bf16 %v2349_v26  ;;  %v2350_v44 = vunpack.i.l.bf16 %v2349_v26  ;;  %v913_v9 = vsel %vm902_vm5, %v2355_v59, %v2345_v32  ;;  %v914_v18 = vsel %vm902_vm5, %v2356_v42, %v2346_v28  ;;  %2005 = vmatprep.subr.msk.bf16.mxu1 %vm3547_vm4, %v2003_v58  ;;  %1697 = vperm.xlu0 %2642, %v1691_v56   ;;  %v1027_v56 = vld [vmem:[#allocation10 + $0x70] sm:$0xff] }
 0x154   : > { %2638 = vrot.lane.b32.xlu1 %v2860_v1, %s2866_s14  ;;  %1958 = vmatpush1.bf16.msra.mxu0 %v1957_v43  ;;  %v2364_v31 = vpop.permute.xlu0 %2363  ;;  %v1981_v29 = vpack.c.bf16 %v914_v18, %v913_v9  ;;  %v1025_v43 = vld [vmem:[#allocation10 + $0x60] sm:$0xff] }
 0x155   : > { %v903_v46 = vsel %vm902_vm5, %v2345_v32, %v2350_v44  ;;  %v904_v62 = vsel %vm902_vm5, %v2346_v28, %v2351_v41  ;;  %v2366_v48 = vunpack.i.h.bf16 %v2364_v31  ;;  %v2365_v37 = vunpack.i.l.bf16 %v2364_v31  ;;  %1900 = vmatmul.mubr.msk.f32.gmra.mrb[2].mxu1 %vm642_vm6, %v472_v8 }
 0x156   : > { %v2359_v49 = vpop.permute.xlu1 %2358  ;;  %v1979_v50 = vpack.c.bf16 %v904_v62, %v903_v46  ;;  %2006 = vmatpush1.bf16.msra.mxu1 %v2867_v45  ;;  %826 = vmatprep.mubr.f32.mxu1 %v2860_v1 }
 0x157   : > { %v2361_v30 = vunpack.i.h.bf16 %v2359_v49  ;;  %v2360_v51 = vunpack.i.l.bf16 %v2359_v49  ;;  %1895 = vmatmul.mubr.msk.f32.vlgmr.msra.gmra.mrb[0].mxu0 %vm642_vm6, %v557_v19  ;;  %2009 = vmatprep.subr.msk.bf16.mxu1 %vm3547_vm4, %v2007_v60  ;;  %v1026_v60 = vld [vmem:[#allocation10 + $0x68] sm:$0xff] }
 0x158   : > { %1980 = vmatprep.subr.bf16.mxu0 %v1979_v50  ;;  %v2374_v63 = vpop.permute.xlu0 %2373  ;;  %724 = vmatprep.mubr.f32.mxu0 %v2860_v1 }
 0x159   : > { %1982 = vmatpush1.bf16.msra.mxu0 %v1981_v29  ;;  %v905_v0 = vsel %vm902_vm5, %v2360_v51, %v2365_v37  ;;  %v906_v52 = vsel %vm902_vm5, %v2361_v30, %v2366_v48  ;;  %v2376_v34 = vunpack.i.h.bf16 %v2374_v63  ;;  %v2375_v7 = vunpack.i.l.bf16 %v2374_v63  ;;  %1901 = vmatmul.mubr.msk.f32.gmra.mrb[4].mxu1 %vm642_vm6, %v473_v4 }
 0x15a   : > { %v2369_v53 = vpop.permute.xlu1 %2368  ;;  %v1983_v3 = vpack.c.bf16 %v906_v52, %v905_v0  ;;  %2010 = vmatpush1.bf16.msra.mxu1 %v2867_v45  ;;  %831 = vmatprep.mubr.f32.mxu1 %v2860_v1 }
 0x15b   : > { %v2371_v5 = vunpack.i.h.bf16 %v2369_v53  ;;  %v2370_v6 = vunpack.i.l.bf16 %v2369_v53  ;;  %1896 = vmatmul.mubr.msk.f32.gmra.mrb[2].mxu0 %vm642_vm6, %v558_v57  ;;  %2013 = vmatprep.subr.msk.bf16.mxu1 %vm3547_vm4, %v2011_v61 }
 0x15c   : > { %1984 = vmatprep.subr.bf16.mxu0 %v1983_v3  ;;  %v2384_v55 = vpop.permute.xlu0 %2383  ;;  %729 = vmatprep.mubr.f32.mxu0 %v2860_v1 }
 0x15d   : > { %v915_v13 = vsel %vm902_vm5, %v2370_v6, %v2360_v51  ;;  %v916_v14 = vsel %vm902_vm5, %v2371_v5, %v2361_v30  ;;  %v2386_v16 = vunpack.i.h.bf16 %v2384_v55  ;;  %v2385_v17 = vunpack.i.l.bf16 %v2384_v55  ;;  %1702 = vperm.xlu1 %2643, %v1692_v33   ;;  %1902 = vmatmul.mubr.msk.f32.gmra.mrb[6].mxu1 %vm642_vm6, %v474_v23 }
 0x15e   : > { %v1985_v15 = vpack.c.bf16 %v916_v14, %v915_v13  ;;  %v2379_v22 = vpop.permute.xlu1 %2378  ;;  %2014 = vmatpush1.bf16.msra.mxu1 %v2867_v45  ;;  %1105 = vmatprep.mubr.f32.mxu1 %v2860_v1  ;;  %v838_v14 = vld [vmem:[#allocation10 + $0x40] sm:$0xff] }
 0x15f   : > { %v2381_v38 = vunpack.i.h.bf16 %v2379_v22  ;;  %v2380_v39 = vunpack.i.l.bf16 %v2379_v22  ;;  %1897 = vmatmul.mubr.msk.f32.gmra.mrb[4].mxu0 %vm642_vm6, %v559_v11  ;;  %v917_v21 = vsel %vm902_vm5, %v2385_v17, %v2375_v7  ;;  %v918_v24 = vsel %vm902_vm5, %v2386_v16, %v2376_v34  ;;  %2017 = vmatprep.subr.msk.bf16.mxu1 %vm3547_vm4, %v2015_v12 }
 0x160   : > { %1986 = vmatpush1.bf16.msra.mxu0 %v1985_v15  ;;  %v2394_v27 = vpop.permute.xlu0 %2393  ;;  %734 = vmatprep.mubr.f32.mxu0 %v2860_v1  ;;  %v1989_v42 = vpack.c.bf16 %v918_v24, %v917_v21  ;;  %v839_v21 = vld [vmem:[#allocation10 + $0x48] sm:$0xff] }
 0x161   : > { %v907_v28 = vsel %vm902_vm5, %v2375_v7, %v2380_v39  ;;  %v908_v32 = vsel %vm902_vm5, %v2376_v34, %v2381_v38  ;;  %v2396_v35 = vunpack.i.h.bf16 %v2394_v27  ;;  %v2395_v36 = vunpack.i.l.bf16 %v2394_v27  ;;  %1712 = vperm.xlu0 %2642, %v1694_v20   ;;  %1707 = vperm.xlu1 %2643, %v1693_v54   ;;  %v1028_v7 = vld [vmem:[#allocation10 + $0x78] sm:$0xff] }
 0x162   : > { %v2389_v40 = vpop.permute.xlu1 %2388  ;;  %v1987_v58 = vpack.c.bf16 %v908_v32, %v907_v28  ;;  %2018 = vmatpush1.bf16.msra.mxu1 %v2867_v45 }
 0x163   : > { %v2391_v59 = vunpack.i.h.bf16 %v2389_v40  ;;  %v2390_v26 = vunpack.i.l.bf16 %v2389_v40  ;;  %1898 = vmatmul.mubr.msk.f32.gmra.mrb[6].mxu0 %vm642_vm6, %v560_v25 }
 0x164   : > { %1988 = vmatprep.subr.bf16.mxu0 %v1987_v58  ;;  %999 = vmatprep.mubr.f32.mxu0 %v2860_v1  ;;  %v2404_v41 = vpop.permute.xlu0 %2403 }
 0x165   : > { %1990 = vmatpush1.bf16.msra.mxu0 %v1989_v42  ;;  %v909_v44 = vsel %vm902_vm5, %v2390_v26, %v2395_v36  ;;  %v910_v8 = vsel %vm902_vm5, %v2391_v59, %v2396_v35  ;;  %1917 = vmatmul.mubr.msk.f32.vlgmr.msra.gmra.mrb[8].mxu1 %vm642_vm6, %v1025_v43  ;;  %v2406_v31 = vunpack.i.h.bf16 %v2404_v41  ;;  %v2405_v46 = vunpack.i.l.bf16 %v2404_v41 }
 0x166   : > { %v2399_v9 = vpop.permute.xlu1 %2398  ;;  %v1991_v18 = vpack.c.bf16 %v910_v8, %v909_v44  ;;  %1110 = vmatprep.mubr.f32.mxu1 %v2860_v1  ;;  %v840_v8 = vld [vmem:[#allocation10 + $0x50] sm:$0xff] }
 0x167   : > { %v2401_v45 = vunpack.i.h.bf16 %v2399_v9  ;;  %v2400_v19 = vunpack.i.l.bf16 %v2399_v9 }
 0x168   : > { %1992 = vmatprep.subr.bf16.mxu0 %v1991_v18  ;;  %v2414_v48 = vpop.permute.xlu0 %2413 }
 0x169   : > { %v919_v62 = vsel %vm902_vm5, %v2400_v19, %v2390_v26  ;;  %v920_v47 = vsel %vm902_vm5, %v2401_v45, %v2391_v59  ;;  %v2416_v49 = vunpack.i.h.bf16 %v2414_v48  ;;  %v2415_v50 = vunpack.i.l.bf16 %v2414_v48  ;;  %1918 = vmatmul.mubr.msk.f32.gmra.mrb[10].mxu1 %vm642_vm6, %v1026_v60  ;;  %v841_v48 = vld [vmem:[#allocation10 + $0x58] sm:$0xff] }
 0x16a   : > { %v1993_v37 = vpack.c.bf16 %v920_v47, %v919_v62  ;;  %v2409_v29 = vpop.permute.xlu1 %2408  ;;  %1115 = vmatprep.mubr.f32.mxu1 %v2860_v1 }
 0x16b   : > { %v2411_v30 = vunpack.i.h.bf16 %v2409_v29  ;;  %v2410_v51 = vunpack.i.l.bf16 %v2409_v29  ;;  %v921_v57 = vsel %vm902_vm5, %v2415_v50, %v2405_v46  ;;  %v922_v61 = vsel %vm902_vm5, %v2416_v49, %v2406_v31 }
 0x16c   : > { %1994 = vmatpush1.bf16.msra.mxu0 %v1993_v37  ;;  %v2424_v63 = vpop.permute.xlu0 %2423  ;;  %v1997_v6 = vpack.c.bf16 %v922_v61, %v921_v57 }
 0x16d   : > { %v911_v0 = vsel %vm902_vm5, %v2405_v46, %v2410_v51  ;;  %v912_v52 = vsel %vm902_vm5, %v2406_v31, %v2411_v30  ;;  %v2426_v53 = vunpack.i.h.bf16 %v2424_v63  ;;  %v2425_v3 = vunpack.i.l.bf16 %v2424_v63  ;;  %1919 = vmatmul.mubr.msk.f32.gmra.mrb[12].mxu1 %vm642_vm6, %v1027_v56 }
 0x16e   : > { %v2419_v4 = vpop.permute.xlu1 %2418  ;;  %v1995_v5 = vpack.c.bf16 %v912_v52, %v911_v0  ;;  %1120 = vmatprep.mubr.f32.mxu1 %v2860_v1 }
 0x16f   : > { %v2421_v33 = vunpack.i.h.bf16 %v2419_v4  ;;  %v2420_v34 = vunpack.i.l.bf16 %v2419_v4 }
 0x170   : > { %1996 = vmatprep.subr.bf16.mxu0 %v1995_v5  ;;  %v2434_v11 = vpop.permute.xlu0 %2433 }
 0x171   : > { %1998 = vmatpush1.bf16.msra.mxu0 %v1997_v6  ;;  %v1196_v12 = vsel %vm1195_vm7, %v2420_v34, %v2425_v3  ;;  %v1197_v13 = vsel %vm1195_vm7, %v2421_v33, %v2426_v53  ;;  %v2436_v55 = vunpack.i.h.bf16 %v2434_v11  ;;  %v2435_v15 = vunpack.i.l.bf16 %v2434_v11  ;;  %1920 = vmatmul.mubr.msk.f32.gmra.mrb[14].mxu1 %vm642_vm6, %v1028_v7 }
 0x172   : > { %v2429_v16 = vpop.permute.xlu1 %2428  ;;  %v2019_v17 = vpack.c.bf16 %v1197_v13, %v1196_v12  ;;  %1479 = vmatprep.mubr.f32.mxu1 %v2860_v1 }
 0x173   : > { %v2431_v22 = vunpack.i.h.bf16 %v2429_v16  ;;  %v2430_v23 = vunpack.i.l.bf16 %v2429_v16 }
 0x174   : > { %2020 = vmatprep.subr.bf16.mxu0 %v2019_v17  ;;  %1903 = vmatmul.mubr.msk.f32.vlgmr.msra.gmra.mrb[8].mxu0 %vm642_vm6, %v838_v14  ;;  %v2444_v38 = vpop.permute.xlu0 %2443 }
 0x175   : > { %v1383_v39 = vsel %vm1382_vm8, %v2430_v23, %v2435_v15  ;;  %v1384_v20 = vsel %vm1382_vm8, %v2431_v22, %v2436_v55  ;;  %1004 = vmatprep.mubr.f32.mxu0 %v2860_v1  ;;  %v2446_v24 = vunpack.i.h.bf16 %v2444_v38  ;;  %v2445_v25 = vunpack.i.l.bf16 %v2444_v38 }
 0x176   : > { %v2439_v27 = vpop.permute.xlu1 %2438  ;;  %v2039_v28 = vpack.c.bf16 %v1384_v20, %v1383_v39 }
 0x177   : > { %v2441_v32 = vunpack.i.h.bf16 %v2439_v27  ;;  %v2440_v35 = vunpack.i.l.bf16 %v2439_v27  ;;  %v1393_v36 = vsel %vm1382_vm8, %v2445_v25, %v2430_v23  ;;  %v1394_v40 = vsel %vm1382_vm8, %v2446_v24, %v2431_v22 }
 0x178   : > { %2040 = vmatprep.subr.bf16.mxu1 %v2039_v28  ;;  %1904 = vmatmul.mubr.msk.f32.gmra.mrb[10].mxu0 %vm642_vm6, %v839_v21  ;;  %v2041_v58 = vpack.c.bf16 %v1394_v40, %v1393_v36  ;;  %v2454_v59 = vpop.permute.xlu0 %2453 }
 0x179   : > { %v1206_v54 = vsel %vm1195_vm7, %v2440_v35, %v2420_v34  ;;  %v1207_v42 = vsel %vm1195_vm7, %v2441_v32, %v2421_v33  ;;  %1009 = vmatprep.mubr.f32.mxu0 %v2860_v1  ;;  %v2456_v43 = vunpack.i.h.bf16 %v2454_v59  ;;  %v2455_v41 = vunpack.i.l.bf16 %v2454_v59 }
 0x17a   : > { %v2021_v26 = vpack.c.bf16 %v1207_v42, %v1206_v54  ;;  %v2449_v44 = vpop.permute.xlu1 %2448  ;;  %2042 = vmatpush1.bf16.msra.mxu1 %v2041_v58 }
 0x17b   : > { %v2451_v9 = vunpack.i.h.bf16 %v2449_v44  ;;  %v2450_v18 = vunpack.i.l.bf16 %v2449_v44 }
 0x17c   : > { %2022 = vmatpush1.bf16.msra.mxu0 %v2021_v26  ;;  %v2464_v45 = vpop.permute.xlu0 %2463 }
 0x17d   : > { %v1198_v19 = vsel %vm1195_vm7, %v2450_v18, %v2455_v41  ;;  %v1199_v60 = vsel %vm1195_vm7, %v2451_v9, %v2456_v43  ;;  %1905 = vmatmul.mubr.msk.f32.gmra.mrb[12].mxu0 %vm642_vm6, %v840_v8  ;;  %v2466_v31 = vunpack.i.h.bf16 %v2464_v45  ;;  %v2465_v46 = vunpack.i.l.bf16 %v2464_v45 }
 0x17e   : > { %v2459_v62 = vpop.permute.xlu1 %2458  ;;  %v2023_v47 = vpack.c.bf16 %v1199_v60, %v1198_v19  ;;  %1014 = vmatprep.mubr.f32.mxu0 %v2860_v1 }
 0x17f   : > { %v2461_v37 = vunpack.i.h.bf16 %v2459_v62  ;;  %v2460_v49 = vunpack.i.l.bf16 %v2459_v62 }
 0x180   : > { %2024 = vmatprep.subr.bf16.mxu0 %v2023_v47  ;;  %v2474_v50 = vpop.permute.xlu0 %2473 }
 0x181   : > { %v1385_v29 = vsel %vm1382_vm8, %v2460_v49, %v2465_v46  ;;  %v1386_v30 = vsel %vm1382_vm8, %v2461_v37, %v2466_v31  ;;  %1906 = vmatmul.mubr.msk.f32.gmra.mrb[14].mxu0 %vm642_vm6, %v841_v48  ;;  %v2476_v51 = vunpack.i.h.bf16 %v2474_v50  ;;  %v2475_v56 = vunpack.i.l.bf16 %v2474_v50 }
 0x182   : > { %v2469_v57 = vpop.permute.xlu1 %2468  ;;  %v2043_v61 = vpack.c.bf16 %v1386_v30, %v1385_v29  ;;  %1292 = vmatprep.mubr.f32.mxu0 %v2860_v1 }
 0x183   : > { %v2471_v63 = vunpack.i.h.bf16 %v2469_v57  ;;  %v2470_v0 = vunpack.i.l.bf16 %v2469_v57  ;;  %v1395_v52 = vsel %vm1382_vm8, %v2475_v56, %v2460_v49  ;;  %v1396_v53 = vsel %vm1382_vm8, %v2476_v51, %v2461_v37 }
 0x184   : > { %2044 = vmatprep.subr.bf16.mxu1 %v2043_v61  ;;  %v2045_v3 = vpack.c.bf16 %v1396_v53, %v1395_v52  ;;  %v2484_v6 = vpop.permute.xlu0 %2483 }
 0x185   : > { %v1208_v4 = vsel %vm1195_vm7, %v2470_v0, %v2450_v18  ;;  %v1209_v5 = vsel %vm1195_vm7, %v2471_v63, %v2451_v9  ;;  %v2486_v34 = vunpack.i.h.bf16 %v2484_v6  ;;  %v2485_v7 = vunpack.i.l.bf16 %v2484_v6 }
 0x186   : > { %v2025_v33 = vpack.c.bf16 %v1209_v5, %v1208_v4  ;;  %v2479_v11 = vpop.permute.xlu1 %2478  ;;  %2046 = vmatpush1.bf16.msra.mxu1 %v2045_v3 }
 0x187   : > { %v2481_v12 = vunpack.i.h.bf16 %v2479_v11  ;;  %v2480_v13 = vunpack.i.l.bf16 %v2479_v11 }
 0x188   : > { %2026 = vmatpush1.bf16.msra.mxu0 %v2025_v33  ;;  %v2494_v14 = vpop.permute.xlu0 %2493 }
 0x189   : > { %v1200_v55 = vsel %vm1195_vm7, %v2480_v13, %v2485_v7  ;;  %v1201_v15 = vsel %vm1195_vm7, %v2481_v12, %v2486_v34  ;;  %v2496_v16 = vunpack.i.h.bf16 %v2494_v14  ;;  %v2495_v17 = vunpack.i.l.bf16 %v2494_v14 }
 0x18a   : > { %v2489_v22 = vpop.permute.xlu1 %2488  ;;  %v2027_v23 = vpack.c.bf16 %v1201_v15, %v1200_v55 }
 0x18b   : > { %v2491_v38 = vunpack.i.h.bf16 %v2489_v22  ;;  %v2490_v39 = vunpack.i.l.bf16 %v2489_v22 }
 0x18c   : > { %2028 = vmatprep.subr.bf16.mxu0 %v2027_v23  ;;  %v2504_v20 = vpop.permute.xlu0 %2503 }
 0x18d   : > { %v1387_v21 = vsel %vm1382_vm8, %v2490_v39, %v2495_v17  ;;  %v1388_v24 = vsel %vm1382_vm8, %v2491_v38, %v2496_v16  ;;  %v2506_v25 = vunpack.i.h.bf16 %v2504_v20  ;;  %v2505_v27 = vunpack.i.l.bf16 %v2504_v20 }
 0x18e   : > { %v2499_v28 = vpop.permute.xlu1 %2498  ;;  %v2047_v32 = vpack.c.bf16 %v1388_v24, %v1387_v21 }
 0x18f   : > { %v2501_v35 = vunpack.i.h.bf16 %v2499_v28  ;;  %v2500_v36 = vunpack.i.l.bf16 %v2499_v28  ;;  %v1397_v40 = vsel %vm1382_vm8, %v2505_v27, %v2490_v39  ;;  %v1398_v58 = vsel %vm1382_vm8, %v2506_v25, %v2491_v38 }
 0x190   : > { %2048 = vmatprep.subr.bf16.mxu1 %v2047_v32  ;;  %v2049_v54 = vpack.c.bf16 %v1398_v58, %v1397_v40  ;;  %v2514_v26 = vpop.permute.xlu0 %2513 }
 0x191   : > { %v1210_v42 = vsel %vm1195_vm7, %v2500_v36, %v2480_v13  ;;  %v1211_v59 = vsel %vm1195_vm7, %v2501_v35, %v2481_v12  ;;  %v2516_v41 = vunpack.i.h.bf16 %v2514_v26  ;;  %v2515_v44 = vunpack.i.l.bf16 %v2514_v26 }
 0x192   : > { %v2029_v43 = vpack.c.bf16 %v1211_v59, %v1210_v42  ;;  %v2509_v8 = vpop.permute.xlu1 %2508  ;;  %2050 = vmatpush1.bf16.msra.mxu1 %v2049_v54 }
 0x193   : > { %v2511_v9 = vunpack.i.h.bf16 %v2509_v8  ;;  %v2510_v18 = vunpack.i.l.bf16 %v2509_v8 }
 0x194   : > { %2030 = vmatpush1.bf16.msra.mxu0 %v2029_v43  ;;  %v2524_v45 = vpop.permute.xlu0 %2523 }
 0x195   : > { %v1202_v19 = vsel %vm1195_vm7, %v2510_v18, %v2515_v44  ;;  %v1203_v60 = vsel %vm1195_vm7, %v2511_v9, %v2516_v41  ;;  %v2526_v31 = vunpack.i.h.bf16 %v2524_v45  ;;  %v2525_v46 = vunpack.i.l.bf16 %v2524_v45  ;;  %v1131_v45 = vld [vmem:[#allocation10 + $0x80] sm:$0xff] }
 0x196   : > { %v2519_v62 = vpop.permute.xlu1 %2518  ;;  %v2031_v47 = vpack.c.bf16 %v1203_v60, %v1202_v19 }
 0x197   : > { %v2521_v48 = vunpack.i.h.bf16 %v2519_v62  ;;  %v2520_v37 = vunpack.i.l.bf16 %v2519_v62 }
 0x198   : > { %2032 = vmatprep.subr.bf16.mxu0 %v2031_v47  ;;  %v2534_v49 = vpop.permute.xlu0 %2533 }
 0x199   : > { %v1389_v50 = vsel %vm1382_vm8, %v2520_v37, %v2525_v46  ;;  %v1390_v29 = vsel %vm1382_vm8, %v2521_v48, %v2526_v31  ;;  %v2536_v30 = vunpack.i.h.bf16 %v2534_v49  ;;  %v2535_v51 = vunpack.i.l.bf16 %v2534_v49 }
 0x19a   : > { %v2529_v56 = vpop.permute.xlu1 %2528  ;;  %v2051_v57 = vpack.c.bf16 %v1390_v29, %v1389_v50  ;;  %v1132_v29 = vld [vmem:[#allocation10 + $0x88] sm:$0xff] }
 0x19b   : > { %v2531_v61 = vunpack.i.h.bf16 %v2529_v56  ;;  %v2530_v63 = vunpack.i.l.bf16 %v2529_v56  ;;  %v1399_v0 = vsel %vm1382_vm8, %v2535_v51, %v2520_v37  ;;  %v1400_v52 = vsel %vm1382_vm8, %v2536_v30, %v2521_v48  ;;  %v1319_v37 = vld [vmem:[#allocation10 + $0xa8] sm:$0xff] }
 0x19c   : > { %2052 = vmatprep.subr.bf16.mxu1 %v2051_v57  ;;  %v2053_v53 = vpack.c.bf16 %v1400_v52, %v1399_v0  ;;  %v2544_v5 = vpop.permute.xlu0 %2543 }
 0x19d   : > { %v1212_v3 = vsel %vm1195_vm7, %v2530_v63, %v2510_v18  ;;  %v1213_v4 = vsel %vm1195_vm7, %v2531_v61, %v2511_v9  ;;  %v2546_v33 = vunpack.i.h.bf16 %v2544_v5  ;;  %v2545_v34 = vunpack.i.l.bf16 %v2544_v5  ;;  %v1318_v18 = vld [vmem:[#allocation10 + $0xa0] sm:$0xff] }
 0x19e   : > { %v2033_v6 = vpack.c.bf16 %v1213_v4, %v1212_v3  ;;  %v2539_v7 = vpop.permute.xlu1 %2538  ;;  %2054 = vmatpush1.bf16.msra.mxu1 %v2053_v53  ;;  %v1320_v3 = vld [vmem:[#allocation10 + $0xb0] sm:$0xff] }
 0x19f   : > { %v2541_v11 = vunpack.i.h.bf16 %v2539_v7  ;;  %v2540_v12 = vunpack.i.l.bf16 %v2539_v7 }
 0x1a0   : > { %2034 = vmatpush1.bf16.msra.mxu0 %v2033_v6  ;;  %v2554_v13 = vpop.permute.xlu0 %2553  ;;  %v1133_v6 = vld [vmem:[#allocation10 + $0x90] sm:$0xff] }
 0x1a1   : > { %v1204_v14 = vsel %vm1195_vm7, %v2540_v12, %v2545_v34  ;;  %v1205_v55 = vsel %vm1195_vm7, %v2541_v11, %v2546_v33  ;;  %v2556_v15 = vunpack.i.h.bf16 %v2554_v13  ;;  %v2555_v16 = vunpack.i.l.bf16 %v2554_v13 }
 0x1a2   : > { %v2549_v17 = vpop.permute.xlu1 %2548  ;;  %v2035_v22 = vpack.c.bf16 %v1205_v55, %v1204_v14 }
 0x1a3   : > { %v2551_v23 = vunpack.i.h.bf16 %v2549_v17  ;;  %v2550_v38 = vunpack.i.l.bf16 %v2549_v17  ;;  %v1321_v17 = vld [vmem:[#allocation10 + $0xb8] sm:$0xff] }
 0x1a4   : > { %2036 = vmatprep.subr.bf16.mxu0 %v2035_v22  ;;  %v2564_v39 = vpop.permute.xlu0 %2563  ;;  %v1134_v22 = vld [vmem:[#allocation10 + $0x98] sm:$0xff] }
 0x1a5   : > { %v1391_v20 = vsel %vm1382_vm8, %v2550_v38, %v2555_v16  ;;  %v1392_v21 = vsel %vm1382_vm8, %v2551_v23, %v2556_v15  ;;  %v2566_v24 = vunpack.i.h.bf16 %v2564_v39  ;;  %v2565_v25 = vunpack.i.l.bf16 %v2564_v39 }
 0x1a6   : > { %v2559_v27 = vpop.permute.xlu1 %2558  ;;  %v2055_v28 = vpack.c.bf16 %v1392_v21, %v1391_v20 }
 0x1a7   : > { %v2561_v32 = vunpack.i.h.bf16 %v2559_v27  ;;  %v2560_v35 = vunpack.i.l.bf16 %v2559_v27  ;;  %v1401_v36 = vsel %vm1382_vm8, %v2565_v25, %v2550_v38  ;;  %v1402_v40 = vsel %vm1382_vm8, %v2566_v24, %v2551_v23 }
 0x1a8   : > { %2056 = vmatprep.subr.bf16.mxu1 %v2055_v28  ;;  %v2057_v58 = vpack.c.bf16 %v1402_v40, %v1401_v36  ;;  %v2574_v59 = vpop.permute.xlu0 %2573 }
 0x1a9   : > { %v1214_v54 = vsel %vm1195_vm7, %v2560_v35, %v2540_v12  ;;  %v1215_v42 = vsel %vm1195_vm7, %v2561_v32, %v2541_v11  ;;  %v2576_v43 = vunpack.i.h.bf16 %v2574_v59  ;;  %v2575_v41 = vunpack.i.l.bf16 %v2574_v59 }
 0x1aa   : > { %v2037_v26 = vpack.c.bf16 %v1215_v42, %v1214_v54  ;;  %v2569_v44 = vpop.permute.xlu1 %2568  ;;  %2058 = vmatpush1.bf16.msra.mxu1 %v2057_v58 }
 0x1ab   : > { %v2571_v8 = vunpack.i.h.bf16 %v2569_v44  ;;  %v2570_v9 = vunpack.i.l.bf16 %v2569_v44 }
 0x1ac   : > { %2038 = vmatpush1.bf16.msra.mxu0 %v2037_v26  ;;  %v2584_v19 = vpop.permute.xlu0 %2583 }
 0x1ad   : > { %v1570_v60 = vsel %vm1569_vm9, %v2570_v9, %v2575_v41  ;;  %v1571_v31 = vsel %vm1569_vm9, %v2571_v8, %v2576_v43  ;;  %1925 = vmatmul.mubr.msk.f32.vlgmr.msra.gmra.mrb[16].mxu1 %vm642_vm6, %v1318_v18  ;;  %v2586_v49 = vunpack.i.h.bf16 %v2584_v19  ;;  %v2585_v50 = vunpack.i.l.bf16 %v2584_v19 }
 0x1ae   : > { %v2579_v46 = vpop.permute.xlu1 %2578  ;;  %v2059_v62 = vpack.c.bf16 %v1571_v31, %v1570_v60  ;;  %1484 = vmatprep.mubr.f32.mxu1 %v2860_v1 }
 0x1af   : > { %v2581_v47 = vunpack.i.h.bf16 %v2579_v46  ;;  %v2580_v48 = vunpack.i.l.bf16 %v2579_v46  ;;  %1921 = vmatmul.mubr.msk.f32.vlgmr.msra.gmra.mrb[16].mxu0 %vm642_vm6, %v1131_v45 }
 0x1b0   : > { %2060 = vmatprep.subr.bf16.mxu0 %v2059_v62  ;;  %2079 = vmatprep.subr.bf16.mxu1 %v2059_v62  ;;  %v2594_v56 = vpop.permute.xlu0 %2593 }
 0x1b1   : > { %v1580_v30 = vsel %vm1569_vm9, %v2580_v48, %v2570_v9  ;;  %v1581_v51 = vsel %vm1569_vm9, %v2581_v47, %v2571_v8  ;;  %1297 = vmatprep.mubr.f32.mxu0 %v2860_v1  ;;  %v2596_v61 = vunpack.i.h.bf16 %v2594_v56  ;;  %v2595_v63 = vunpack.i.l.bf16 %v2594_v56  ;;  %1926 = vmatmul.mubr.msk.f32.gmra.mrb[18].mxu1 %vm642_vm6, %v1319_v37 }
 0x1b2   : > { %v2061_v57 = vpack.c.bf16 %v1581_v51, %v1580_v30  ;;  %v2589_v0 = vpop.permute.xlu1 %2588  ;;  %1489 = vmatprep.mubr.f32.mxu1 %v2860_v1 }
 0x1b3   : > { %v2591_v52 = vunpack.i.h.bf16 %v2589_v0  ;;  %v2590_v53 = vunpack.i.l.bf16 %v2589_v0  ;;  %1922 = vmatmul.mubr.msk.f32.gmra.mrb[18].mxu0 %vm642_vm6, %v1132_v29  ;;  %v1582_v4 = vsel %vm1569_vm9, %v2595_v63, %v2585_v50  ;;  %v1583_v5 = vsel %vm1569_vm9, %v2596_v61, %v2586_v49  ;;  %v1507_v61 = vld [vmem:[#allocation10 + $0xd0] sm:$0xff]  ;;  %v1506_v63 = vld [vmem:[#allocation10 + $0xc8] sm:$0xff]  ;;  %v1508_v0 = vld [vmem:[#allocation10 + $0xd8] sm:$0xff] }
 0x1b4   : > { %2062 = vmatpush1.bf16.msra.mxu0 %v2061_v57  ;;  %2084 = vmatpush1.bf16.msra.mxu1 %v2061_v57  ;;  %v2604_v33 = vpop.permute.xlu0 %2603  ;;  %v2065_v55 = vpack.c.bf16 %v1583_v5, %v1582_v4  ;;  %v1505_v57 = vld [vmem:[#allocation10 + $0xc0] sm:$0xff] }
 0x1b5   : > { %1302 = vmatprep.mubr.f32.mxu0 %v2860_v1  ;;  %v1572_v34 = vsel %vm1569_vm9, %v2585_v50, %v2590_v53  ;;  %v1573_v7 = vsel %vm1569_vm9, %v2586_v49, %v2591_v52  ;;  %v2606_v11 = vunpack.i.h.bf16 %v2604_v33  ;;  %v2605_v12 = vunpack.i.l.bf16 %v2604_v33  ;;  %1927 = vmatmul.mubr.msk.f32.gmra.mrb[20].mxu1 %vm642_vm6, %v1320_v3 }
 0x1b6   : > { %v2599_v13 = vpop.permute.xlu1 %2598  ;;  %v2063_v14 = vpack.c.bf16 %v1573_v7, %v1572_v34  ;;  %1494 = vmatprep.mubr.f32.mxu1 %v2860_v1 }
 0x1b7   : > { %v2601_v15 = vunpack.i.h.bf16 %v2599_v13  ;;  %v2600_v16 = vunpack.i.l.bf16 %v2599_v13  ;;  %1923 = vmatmul.mubr.msk.f32.gmra.mrb[20].mxu0 %vm642_vm6, %v1133_v6 }
 0x1b8   : > { %2064 = vmatprep.subr.bf16.mxu0 %v2063_v14  ;;  %2080 = vmatprep.subr.bf16.mxu1 %v2063_v14  ;;  %v2614_v23 = vpop.permute.xlu0 %2613 }
 0x1b9   : > { %2066 = vmatpush1.bf16.msra.mxu0 %v2065_v55  ;;  %2085 = vmatpush1.bf16.msra.mxu1 %v2065_v55  ;;  %v1574_v38 = vsel %vm1569_vm9, %v2600_v16, %v2605_v12  ;;  %v1575_v39 = vsel %vm1569_vm9, %v2601_v15, %v2606_v11  ;;  %v2616_v27 = vunpack.i.h.bf16 %v2614_v23  ;;  %v2615_v28 = vunpack.i.l.bf16 %v2614_v23 }
 0x1ba   : > { %v2609_v20 = vpop.permute.xlu1 %2608  ;;  %1307 = vmatprep.mubr.f32.mxu0 %v2860_v1  ;;  %v2067_v21 = vpack.c.bf16 %v1575_v39, %v1574_v38  ;;  %1928 = vmatmul.mubr.msk.f32.gmra.mrb[22].mxu1 %vm642_vm6, %v1321_v17 }
 0x1bb   : > { %v2611_v24 = vunpack.i.h.bf16 %v2609_v20  ;;  %v2610_v25 = vunpack.i.l.bf16 %v2609_v20  ;;  %1924 = vmatmul.mubr.msk.f32.gmra.mrb[22].mxu0 %vm642_vm6, %v1134_v22  ;;  %1676 = vmatprep.mubr.f32.mxu1 %v2860_v1 }
 0x1bc   : > { %2068 = vmatprep.subr.bf16.mxu0 %v2067_v21  ;;  %2081 = vmatprep.subr.bf16.mxu1 %v2067_v21  ;;  %v2624_v36 = vpop.permute.xlu0 %2623 }
 0x1bd   : > { %v1584_v32 = vsel %vm1569_vm9, %v2610_v25, %v2600_v16  ;;  %v1585_v35 = vsel %vm1569_vm9, %v2611_v24, %v2601_v15  ;;  %1666 = vmatprep.mubr.f32.mxu0 %v2860_v1  ;;  %v2626_v58 = vunpack.i.h.bf16 %v2624_v36  ;;  %v2625_v54 = vunpack.i.l.bf16 %v2624_v36 }
 0x1be   : > { %v2069_v40 = vpack.c.bf16 %v1585_v35, %v1584_v32  ;;  %v2619_v42 = vpop.permute.xlu1 %2618 }
 0x1bf   : > { %v2621_v59 = vunpack.i.h.bf16 %v2619_v42  ;;  %v2620_v26 = vunpack.i.l.bf16 %v2619_v42  ;;  %v1586_v43 = vsel %vm1569_vm9, %v2625_v54, %v2615_v28  ;;  %v1587_v41 = vsel %vm1569_vm9, %v2626_v58, %v2616_v27 }
 0x1c0   : > { %2070 = vmatpush1.bf16.msra.mxu0 %v2069_v40  ;;  %2086 = vmatpush1.bf16.msra.mxu1 %v2069_v40  ;;  %v2634_v44 = vpop.permute.xlu0 %2633  ;;  %v2073_v31 = vpack.c.bf16 %v1587_v41, %v1586_v43 }
 0x1c1   : > { %v1576_v8 = vsel %vm1569_vm9, %v2615_v28, %v2620_v26  ;;  %v1577_v9 = vsel %vm1569_vm9, %v2616_v27, %v2621_v59  ;;  %v2636_v18 = vunpack.i.h.bf16 %v2634_v44  ;;  %v2635_v45 = vunpack.i.l.bf16 %v2634_v44 }
 0x1c2   : > { %v2629_v19 = vpop.permute.xlu1 %2628  ;;  %v2071_v60 = vpack.c.bf16 %v1577_v9, %v1576_v8 }
 0x1c3   : > { %v2631_v46 = vunpack.i.h.bf16 %v2629_v19  ;;  %v2630_v62 = vunpack.i.l.bf16 %v2629_v19 }
 0x1c4   : > { %2072 = vmatprep.subr.bf16.mxu0 %v2071_v60  ;;  %2082 = vmatprep.subr.bf16.mxu1 %v2071_v60 }
 0x1c5   : > { %2074 = vmatpush1.bf16.msra.mxu0 %v2073_v31  ;;  %2087 = vmatpush1.bf16.msra.mxu1 %v2073_v31  ;;  %v1578_v47 = vsel %vm1569_vm9, %v2630_v62, %v2635_v45  ;;  %v1579_v48 = vsel %vm1569_vm9, %v2631_v46, %v2636_v18 }
 0x1c6   : > { %v2639_v37 = vpop.permute.xlu1 %2638  ;;  %v2075_v49 = vpack.c.bf16 %v1579_v48, %v1578_v47 }
 0x1c7   : > { %v2641_v50 = vunpack.i.h.bf16 %v2639_v37  ;;  %v2640_v29 = vunpack.i.l.bf16 %v2639_v37 }
 0x1c8   : > { %2076 = vmatprep.subr.bf16.mxu0 %v2075_v49  ;;  %2083 = vmatprep.subr.bf16.mxu1 %v2075_v49 }
 0x1c9   : > { %v1588_v30 = vsel %vm1569_vm9, %v2640_v29, %v2630_v62  ;;  %v1589_v51 = vsel %vm1569_vm9, %v2641_v50, %v2631_v46 }
 0x1ca   : > { %v2077_v56 = vpack.c.bf16 %v1589_v51, %v1588_v30 }
 0x1cc   : > { %2078 = vmatpush1.bf16.msra.mxu0 %v2077_v56  ;;  %2088 = vmatpush1.bf16.msra.mxu1 %v2077_v56 }
 0x1cf   : > { %1929 = vmatmul.mubr.msk.f32.vlgmr.msra.gmra.mrb[24].mxu0 %vm642_vm6, %v1505_v57  ;;  %1931 = vmatmul.mubr.msk.f32.vlgmr.msra.gmra.mrb[24].mxu1 %vm642_vm6, %v1507_v61 }
 0x1d0   : > { %1671 = vmatprep.mubr.f32.mxu0 %v2860_v1  ;;  %1681 = vmatprep.mubr.f32.mxu1 %v2860_v1 }
 0x1d3   : > { %1930 = vmatmul.mubr.msk.f32.gmra.mrb[26].mxu0 %vm642_vm6, %v1506_v63  ;;  %1932 = vmatmul.mubr.msk.f32.gmra.mrb[26].mxu1 %vm642_vm6, %v1508_v0 }
 0x224   : > { %v818_v2 = vpop.f32.mrb[0].mxu1 }
 0x225   : > { %v819_v52 = vpop.f32.mrb[1].mxu1 }
 0x228   : > { %v823_v53 = vpop.f32.mrb[2].mxu1 }
 0x229   : > { %v824_v4 = vpop.f32.mrb[3].mxu1 }
 0x22a   : > { %v721_v3 = vpop.f32.mrb[0].mxu0 }
 0x22b   : > { %v722_v5 = vpop.f32.mrb[1].mxu0 }
 0x22c   : > { %v820_v6 = vadd.f32 %v819_v52, %v722_v5  ;;  %v828_v11 = vpop.f32.mrb[4].mxu1  ;;  %v1703_v5 = vpop.permute.xlu1 %1702 }
 0x22d   : > { %v829_v12 = vpop.f32.mrb[5].mxu1 }
 0x22e   : > { %v726_v33 = vpop.f32.mrb[2].mxu0 }
 0x22f   : > { %v727_v34 = vpop.f32.mrb[3].mxu0 }
 0x230   : > { %v825_v7 = vadd.f32 %v824_v4, %v727_v34  ;;  %v833_v55 = vpop.f32.mrb[6].mxu1  ;;  %v1708_v33 = vpop.permute.xlu1 %1707 }
 0x231   : > { %v834_v15 = vpop.f32.mrb[7].mxu1 }
 0x232   : > { %v731_v13 = vpop.f32.mrb[4].mxu0 }
 0x233   : > { %v732_v1 = vpop.f32.mrb[5].mxu0 }
 0x234   : > { %v830_v14 = vadd.f32 %v829_v12, %v732_v1 }
 0x236   : > { %v736_v16 = vpop.f32.mrb[6].mxu0 }
 0x237   : > { %v737_v17 = vpop.f32.mrb[7].mxu0 }
 0x238   : > { %v835_v22 = vadd.f32 %v834_v15, %v737_v17  ;;  %v1107_v23 = vpop.f32.mrb[8].mxu1 }
 0x239   : > { %v1108_v38 = vpop.f32.mrb[9].mxu1 }
 0x23c   : > { %v1112_v39 = vpop.f32.mrb[10].mxu1 }
 0x23d   : > { %v1113_v20 = vpop.f32.mrb[11].mxu1 }
 0x240   : > { %v1117_v21 = vpop.f32.mrb[12].mxu1 }
 0x241   : > { %v1118_v24 = vpop.f32.mrb[13].mxu1 }
 0x244   : > { %v1122_v25 = vpop.f32.mrb[14].mxu1 }
 0x245   : > { %v1123_v27 = vpop.f32.mrb[15].mxu1 }
 0x247   : > { %v1001_v28 = vpop.f32.mrb[8].mxu0 }
 0x248   : > { %v1002_v32 = vpop.f32.mrb[9].mxu0 }
 0x249   : > { %v1020_v35 = vadd.f32 %v1002_v32, %v820_v6  ;;  %v1698_v6 = vpop.permute.xlu0 %1697 }
 0x24b   : > { %v1126_v36 = vadd.f32 %v1108_v38, %v1020_v35  ;;  %v1006_v40 = vpop.f32.mrb[10].mxu0 }
 0x24c   : > { %v1007_v58 = vpop.f32.mrb[11].mxu0 }
 0x24d   : > { %v1021_v54 = vadd.f32 %v1007_v58, %v825_v7  ;;  %v1713_v21 = vpop.permute.xlu0 %1712 }
 0x24f   : > { %v1127_v42 = vadd.f32 %v1113_v20, %v1021_v54 }
 0x250   : > { %v1011_v59 = vpop.f32.mrb[12].mxu0 }
 0x251   : > { %v1012_v26 = vpop.f32.mrb[13].mxu0 }
 0x252   : > { %v1022_v43 = vadd.f32 %v1012_v26, %v830_v14 }
 0x254   : > { %v1128_v41 = vadd.f32 %v1118_v24, %v1022_v43  ;;  %v1016_v44 = vpop.f32.mrb[14].mxu0 }
 0x255   : > { %v1017_v8 = vpop.f32.mrb[15].mxu0 }
 0x256   : > { %v1023_v9 = vadd.f32 %v1017_v8, %v835_v22 }
 0x258   : > { %v1129_v18 = vadd.f32 %v1123_v27, %v1023_v9 }
 0x280   : > { %v1481_v45 = vpop.f32.mrb[16].mxu1 }
 0x281   : > { %v1482_v60 = vpop.f32.mrb[17].mxu1 }
 0x282   : > { %v1294_v19 = vpop.f32.mrb[16].mxu0 }
 0x283   : > { %v1295_v31 = vpop.f32.mrb[17].mxu0 }
 0x284   : > { %v1313_v46 = vadd.f32 %v1295_v31, %v1126_v36  ;;  %v1486_v62 = vpop.f32.mrb[18].mxu1 }
 0x285   : > { %v1487_v37 = vpop.f32.mrb[19].mxu1 }
 0x286   : > { %v1500_v47 = vadd.f32 %v1482_v60, %v1313_v46  ;;  %v1299_v48 = vpop.f32.mrb[18].mxu0 }
 0x287   : > { %v1300_v49 = vpop.f32.mrb[19].mxu0 }
 0x288   : > { %v1314_v50 = vadd.f32 %v1300_v49, %v1127_v42  ;;  %v1491_v29 = vpop.f32.mrb[20].mxu1 }
 0x289   : > { %v1492_v56 = vpop.f32.mrb[21].mxu1 }
 0x28a   : > { %v1501_v30 = vadd.f32 %v1487_v37, %v1314_v50  ;;  %v1304_v51 = vpop.f32.mrb[20].mxu0 }
 0x28b   : > { %v1305_v57 = vpop.f32.mrb[21].mxu0 }
 0x28c   : > { %v1315_v61 = vadd.f32 %v1305_v57, %v1128_v41 }
 0x28d   : > { %v1496_v63 = vpop.f32.mrb[22].mxu1 }
 0x28e   : > { %v1502_v0 = vadd.f32 %v1492_v56, %v1315_v61  ;;  %v1309_v2 = vpop.f32.mrb[22].mxu0  ;;  %v1497_v52 = vpop.f32.mrb[23].mxu1 }
 0x28f   : > { %v1310_v53 = vpop.f32.mrb[23].mxu0 }
 0x290   : > { %v1316_v3 = vadd.f32 %v1310_v53, %v1129_v18 }
 0x292   : > { %v1503_v4 = vadd.f32 %v1497_v52, %v1316_v3 }
 0x2a2   : > { %v1668_v34 = vpop.f32.mrb[24].mxu0  ;;  %v1678_v7 = vpop.f32.mrb[24].mxu1 }
 0x2a3   : > { %v1669_v11 = vpop.f32.mrb[25].mxu0  ;;  %v1679_v12 = vpop.f32.mrb[25].mxu1 }
 0x2a4   : > { %v1687_v13 = vadd.f32 %v1669_v11, %v1500_v47  ;;  %v1689_v1 = vadd.f32 %v1679_v12, %v1502_v0 }
 0x2a6   : > { %v1715_v14 = vadd.f32 %v1698_v6, %v1687_v13  ;;  %v1717_v55 = vadd.f32 %v1708_v33, %v1689_v1  ;;  %v1673_v15 = vpop.f32.mrb[26].mxu0  ;;  %v1683_v16 = vpop.f32.mrb[26].mxu1 }
 0x2a7   : > { %v1674_v17 = vpop.f32.mrb[27].mxu0  ;;  %v1684_v22 = vpop.f32.mrb[27].mxu1 }
 0x2a8   : > { %v1719_v23 = vsel %vm3191_vm0, %v1715_v14, 0.0  ;;  %v1721_v38 = vsel %vm3191_vm0, %v1717_v55, 0.0  ;;  %v1688_v39 = vadd.f32 %v1674_v17, %v1501_v30  ;;  %v1690_v20 = vadd.f32 %v1684_v22, %v1503_v4 }
 0x2a9   : > { %1723 = vst [vmem:[%s377_s2] sm:$0xff] %v1719_v23  ;;  %1725 = vst [vmem:[%s377_s2 + $0x10] sm:$0xff] %v1721_v38 }
 0x2aa   : > { %v1716_v24 = vadd.f32 %v1703_v5, %v1688_v39  ;;  %v1718_v25 = vadd.f32 %v1713_v21, %v1690_v20 }
 0x2ac   : > { %v1720_v27 = vsel %vm3191_vm0, %v1716_v24, 0.0  ;;  %v1722_v28 = vsel %vm3191_vm0, %v1718_v25, 0.0 }
 0x2ad   : > { %1724 = vst [vmem:[%s377_s2 + $0x8] sm:$0xff] %v1720_v27  ;;  %1726 = vst [vmem:[%s377_s2 + $0x18] sm:$0xff] %v1722_v28 }
 0x2ae   : > { %2775 = shalt.err (!%p2772_p4)
}
 0x2af   : > { %s2776_s21 = scalar_lea.hbm %s3828_s12, 512  ;;  %s2780_s28 = scalar_lea.hbm %s3887_s6, 1024 }
 0x2b0   : > { %p2777_p3 = scmp.ne.s32.totalorder %s3828_s12, %s2776_s21  ;;  %p2781_p8 = scmp.lt.u32.totalorder %s3828_s12, %s3887_s6 }
 0x2b1   : > { %p2782_p12 = scmp.lt.u32.totalorder %s2780_s28, %s2776_s21  ;;  %p2784_p2 = scmp.lt.u32.totalorder %s2776_s21, %s3828_s12 }
 0x2b2   : > { %p2778_p6 = pnand %p2777_p3, %p3940_p13 }
 0x2b3   : > { %p2783_p1 = por %p2782_p12, %p2781_p8 }
 0x2b4   : > { %p2779_p9 = pneg %p2778_p6 }
 0x2b5   : > { %p2785_p11 = por %p2784_p2, %p2783_p1 }
 0x2b7   : > { %p2786_p0 = pnand %p2785_p11, %p2779_p9 }
 0x2b9   : > { %2789 = shalt.err (!%p2786_p0)
}
 0x2ba   : > { %s2870_s10 = smov 128   ;;  %s2871_s1 = smov 8  }
 0x2bb   : > { %2106 = dma.vmem_to_hbm [thread:$0]  (%p3940_p13), %s3823_s30, 512, %s3828_s12, %s1728_s27, %s2870_s10, %s2870_s10, %s2871_s1  }
 0x2bc PF: > { %s3941_s25 = sld [smem:[#allocation19_spill]]  ;;  %s1757_s7 = sand.u32 1, %s2832_s23  }
 0x2bd   : > { %p3942_p5 = scmp.ne.s32.totalorder %s3920_s17, 0  ;;  %s1758_s19 = scalar_lea.sflag [#allocation6], %s1757_s7 }
 0x2c2   : > { %p3943_p10 = scmp.ge.s32.totalorder %s3941_s25, 2 }
 0x2c4   : > { %p2123_p7 = pnand %p3943_p10, %p3942_p5 }
 0x2c6   : > { %2827 = dma.done.wait (!%p2123_p7), %s1758_s19, 512  }
 0x2c7   : > { %2829 = vsyncadd (!%p2123_p7), %s1758_s19, 4294966784  ;;  %s27_s28 = sadd.s32 1, %s3941_s25   ;;  %s3944_s2 = sld [smem:[#allocation17_spill]] }
 0x2c8   : > { %p24_p4 = scmp.ge.s32.totalorder %s27_s28, 4   ;;  %s3945_s25 = sld [smem:[#allocation21_spill]] }
 0x2c9   : > { %s3946_s26 = sld [smem:[#allocation18_spill]]  ;;  %s3947_s27 = sld [smem:[#allocation20_spill]] }
 0x2ca   : > { %s3948_s23 = smov %s2836_s24  ;;  %26 = sbr.rel (!%p24_p4) target bundleno = 13 (0xd), region = 119 }
 0x2cd   : > { %s3949_s24 = smov %s3944_s2 }
 0x2d1   :  { %1763 = vsyncpa [#allocation5], 1 }
 0x2d2   :  { %1765 = vsyncpa [#allocation5 + $0x1], 1 }
 0x2d3   :  { %1766 = vsyncpa [#allocation8], 1 }
 0x2d4   :  { %1768 = vsyncpa [#allocation8 + $0x1], 1 }
 0x2d5   :  { %1769 = vsyncpa [#allocation11], 1 }
 0x2d6   :  { %1770 = vsyncpa [#allocation6], 1 }
 0x2d7   :  { %1772 = vsyncpa [#allocation6 + $0x1], 1 }

</bundles_post_ra>
